<compile_context>
chip_gen: v7x
topology: tpu7x:2x2x1
jax: 0.10.0
libtpu: 0.0.40
codegen_flags: <defaults>
</compile_context>

<pallas_src>
import functools

import jax
import jax.numpy as jnp
from jax import lax
from jax.experimental import pallas as pl
from jax.experimental.pallas import tpu as pltpu


def _batchwise_kernel(n_hidden_layers, batch_ref, px_ref, *rest):
    """rest = (W0, b0, ..., W_{L-1}, b_{L-1}, W_last_T, out_ref, acc_ref)."""
    hidden_refs = rest[: 2 * n_hidden_layers]
    wlast_t_ref = rest[2 * n_hidden_layers]
    out_ref = rest[2 * n_hidden_layers + 1]
    acc_ref = rest[2 * n_hidden_layers + 2]

    k = pl.program_id(1)  # atom-tile (reduction) axis; axis 0 is the core split

    @pl.when(k == 0)
    def _init():
        acc_ref[...] = jnp.zeros_like(acc_ref)

    # Hidden MLP stack on this atom tile: bf16 matmuls, f32 accumulate/bias/SiLU.
    h = px_ref[...]                                            # (TN, F_in) bf16
    for i in range(n_hidden_layers):
        w = hidden_refs[2 * i][...]                            # (in, out) bf16
        b = hidden_refs[2 * i + 1][...]                        # (1, out)  f32
        pre = jnp.dot(h, w, preferred_element_type=jnp.float32) + b
        h = jax.nn.silu(pre).astype(jnp.bfloat16)              # back to bf16 for MXU

    # Segment-sum of hidden activations via bf16 one-hot matmul (output lane = H).
    n_mol_pad, _ = acc_ref.shape
    tile_n = h.shape[0]
    mol_ids = lax.broadcasted_iota(jnp.int32, (n_mol_pad, tile_n), 0)   # (M, TN)
    onehot = (mol_ids == batch_ref[...]).astype(jnp.bfloat16)           # (M, TN) bf16
    acc_ref[...] += jnp.dot(onehot, h, preferred_element_type=jnp.float32)  # f32 acc

    @pl.when(k == pl.num_programs(1) - 1)
    def _finalize():
        # Deferred last linear (no bias), single tiny f32 matmul, lane-dense (n_out, M):
        #   out[o, m] = sum_h Wlast_T[o, h] * acc[m, h]
        out_ref[...] = lax.dot_general(
            wlast_t_ref[...], acc_ref[...],
            dimension_numbers=(((1,), (1,)), ((), ())),
            preferred_element_type=jnp.float32)


def batchwise_forward(atom_batch, px, hidden_params, w_last, n_molecules,
                      *, tile_n=512, num_core_splits=2):
    """Batchwise.forward.

    atom_batch: (N,) int molecule id per atom (must be in [0, n_molecules)).
    px:         (N, F_in) f32 per-atom features.
    hidden_params: list of (W_i (in, out), b_i (out,)) hidden layers (SiLU).
    w_last:     (H_last, n_out) final linear weight, no bias.
    """
    lane, sublane = 128, 8
    n_atoms, f_in = px.shape
    n_out = w_last.shape[1]

    # Molecule axis padded to a sublane multiple; padded rows are sliced off later.
    n_mol_pad = max(sublane, ((n_molecules + sublane - 1) // sublane) * sublane)

    # --- Zero-pad hidden widths to lane (128) multiples (exact: silu(0)=0) ---
    prev_pad = 0
    mlp_arrays, mlp_specs = [], []
    for (w, b) in hidden_params:
        w = jnp.asarray(w, jnp.float32)
        b = jnp.asarray(b, jnp.float32)
        if prev_pad:                                   # match previous layer's padded width
            w = jnp.pad(w, ((0, prev_pad), (0, 0)))
        out_pad = (-w.shape[1]) % lane
        if out_pad:
            w = jnp.pad(w, ((0, 0), (0, out_pad)))
            b = jnp.pad(b, (0, out_pad))
        w_bf = w.astype(jnp.bfloat16)                  # bf16 weights for the MXU
        b2 = b.reshape(1, -1)                          # f32 bias (VPU add stays f32)
        mlp_arrays += [w_bf, b2]
        mlp_specs += [pl.BlockSpec(w_bf.shape, lambda c, k: (0, 0)),
                      pl.BlockSpec(b2.shape, lambda c, k: (0, 0))]
        prev_pad = out_pad

    w_last_p = jnp.asarray(w_last, jnp.float32)
    if prev_pad:
        w_last_p = jnp.pad(w_last_p, ((0, prev_pad), (0, 0)))
    h_pad = w_last_p.shape[0]                          # multiple of 128
    w_last_t = w_last_p.T                              # (n_out, h_pad), f32: one tiny matmul

    # --- Pad atom axis so it splits evenly into num_core_splits x tiles ---
    tiles = max(1, pl.cdiv(n_atoms, tile_n))
    tiles_per_split = pl.cdiv(tiles, num_core_splits)
    n_total = num_core_splits * tiles_per_split * tile_n
    n_pad_atoms = n_total - n_atoms

    px_bf = px.astype(jnp.bfloat16)                    # halve the dominant HBM stream
    atom_batch = jnp.asarray(atom_batch, jnp.int32)
    if n_pad_atoms:
        px_bf = jnp.pad(px_bf, ((0, n_pad_atoms), (0, 0)))
        # padded atoms get id == n_mol_pad -> they miss every one-hot row
        atom_batch = jnp.pad(atom_batch, (0, n_pad_atoms), constant_values=n_mol_pad)
    batch_2d = atom_batch.reshape(1, n_total)

    in_arrays = [batch_2d, px_bf] + mlp_arrays + [w_last_t]
    in_specs = [
        pl.BlockSpec((1, tile_n),
                     lambda c, k: (0, c * tiles_per_split + k)),      # atom -> molecule ids
        pl.BlockSpec((tile_n, f_in),
                     lambda c, k: (c * tiles_per_split + k, 0)),      # px tile (bf16)
    ] + mlp_specs + [pl.BlockSpec(w_last_t.shape, lambda c, k: (0, 0))]

    kernel = functools.partial(_batchwise_kernel, len(hidden_params))

    out = pl.pallas_call(
        kernel,
        out_shape=jax.ShapeDtypeStruct((num_core_splits, n_out, n_mol_pad), jnp.float32),
        grid_spec=pltpu.PrefetchScalarGridSpec(
            num_scalar_prefetch=0,
            grid=(num_core_splits, tiles_per_split),
            in_specs=in_specs,
            out_specs=pl.BlockSpec((None, n_out, n_mol_pad), lambda c, k: (c, 0, 0)),
            scratch_shapes=[pltpu.VMEM((n_mol_pad, h_pad), jnp.float32)],
        ),
        compiler_params=pltpu.CompilerParams(
            # core split is "parallel" (uses both v7x TCs; serial no-op on v5e/v6e),
            # atom-tile axis is the reduction ("arbitrary").
            dimension_semantics=("parallel", "arbitrary"),
            vmem_limit_bytes=48 * 1024 * 1024,   # within v7x's 64 MiB physical budget
        ),
    )(*in_arrays)

    result = jnp.sum(out, axis=0)                 # combine per-core partial slabs
    result = result[:, :n_molecules].T            # (n_molecules, n_out)
    return jnp.squeeze(result)                    # matches torch `.squeeze()`


if __name__ == "__main__":
    key = jax.random.PRNGKey(0)
    k_px, k_batch, k_w0, k_b0, k_w1, k_b1, k_wl = jax.random.split(key, 7)

    N_ATOMS, F_IN, HID0, HID1, N_OUT, N_MOL = 200, 32, 64, 96, 1, 6
    TILE_N = 512

    px = jax.random.normal(k_px, (N_ATOMS, F_IN), dtype=jnp.float32)
    atom_batch = jax.random.randint(k_batch, (N_ATOMS,), 0, N_MOL).astype(jnp.int32)

    # FeedForward([F_IN, HID0, HID1, N_OUT], activation=silu, last_bias=False) params.
    w0 = jax.random.normal(k_w0, (F_IN, HID0), dtype=jnp.float32) / jnp.sqrt(jnp.float32(F_IN))
    b0 = jax.random.normal(k_b0, (HID0,), dtype=jnp.float32) * 0.1
    w1 = jax.random.normal(k_w1, (HID0, HID1), dtype=jnp.float32) / jnp.sqrt(jnp.float32(HID0))
    b1 = jax.random.normal(k_b1, (HID1,), dtype=jnp.float32) * 0.1
    w_last = jax.random.normal(k_wl, (HID1, N_OUT), dtype=jnp.float32) / jnp.sqrt(jnp.float32(HID1))

    result = batchwise_forward(atom_batch, px, [(w0, b0), (w1, b1)], w_last, N_MOL,
                               tile_n=TILE_N)
    jax.block_until_ready(result)

    # Plain-JAX f32 reference of Batchwise.forward
    h_ref = jax.nn.silu(px @ w0 + b0)
    h_ref = jax.nn.silu(h_ref @ w1 + b1)
    y_ref = h_ref @ w_last                                   # (N, 1)
    res_ref = jax.ops.segment_sum(y_ref, atom_batch, num_segments=N_MOL)
    ref = jnp.squeeze(res_ref)                               # (N_MOL,)

    assert result.shape == ref.shape, (result.shape, ref.shape)
    # bf16 matmul operands (f32 accumulation) -> slightly looser tolerance vs f32 ref.
    assert jnp.allclose(result, ref, atol=1e-1, rtol=5e-2), (result, ref)

    print("KERNEL_OK")
</pallas_src>

<mosaic_0001>
module attributes {stable_mosaic.version = 11 : i64} {
  func.func @_batchwise_kernel(%arg0: i32, %arg1: i32, %arg2: memref<1x512xi32, #tpu.memory_space<vmem>>, %arg3: memref<512x32xbf16, #tpu.memory_space<vmem>>, %arg4: memref<32x128xbf16, #tpu.memory_space<vmem>>, %arg5: memref<1x128xf32, #tpu.memory_space<vmem>>, %arg6: memref<128x128xbf16, #tpu.memory_space<vmem>>, %arg7: memref<1x128xf32, #tpu.memory_space<vmem>>, %arg8: memref<1x128xf32, #tpu.memory_space<vmem>>, %arg9: memref<1x1x8xf32, #tpu.memory_space<vmem>>, %arg10: memref<8x128xf32, #tpu.memory_space<vmem>>) attributes {dimension_semantics = [#tpu.dimension_semantics<parallel>, #tpu.dimension_semantics<arbitrary>], iteration_bounds = array<i64: 2, 1>, scalar_prefetch = 0 : i64, scratch_operands = 1 : i64, tpu.core_type = #tpu.core_type<tc>, window_params = [{transform_indices = @transform_0, window_bounds = array<i64: 1, 512>}, {transform_indices = @transform_1, window_bounds = array<i64: 512, 32>}, {pipeline_mode = #tpu.pipeline_mode<synchronous>, transform_indices = @transform_2, window_bounds = array<i64: 32, 128>}, {pipeline_mode = #tpu.pipeline_mode<synchronous>, transform_indices = @transform_3, window_bounds = array<i64: 1, 128>}, {pipeline_mode = #tpu.pipeline_mode<synchronous>, transform_indices = @transform_4, window_bounds = array<i64: 128, 128>}, {pipeline_mode = #tpu.pipeline_mode<synchronous>, transform_indices = @transform_5, window_bounds = array<i64: 1, 128>}, {pipeline_mode = #tpu.pipeline_mode<synchronous>, transform_indices = @transform_6, window_bounds = array<i64: 1, 128>}, {transform_indices = @transform_7, window_bounds = array<i64: 1, 1, 8>}]} {
    %c0_i32 = arith.constant 0 : i32
    %0 = arith.cmpi eq, %arg1, %c0_i32 : i32
    %1 = arith.extui %0 : i1 to i32
    %c0_i32_0 = arith.constant 0 : i32
    %2 = arith.cmpi ne, %1, %c0_i32_0 : i32
    scf.if %2 {
      %cst_22 = arith.constant 0.000000e+00 : f32
      %42 = vector.broadcast %cst_22 : f32 to vector<8x128xf32>
      %c0_23 = arith.constant 0 : index
      %c0_24 = arith.constant 0 : index
      %43 = vector.load %arg10[%c0_23, %c0_24] : memref<8x128xf32, #tpu.memory_space<vmem>>, vector<8x128xf32>
      tpu.vector_store %arg10[%c0_23, %c0_24], %42 {strides = array<i32>} : memref<8x128xf32, #tpu.memory_space<vmem>>, vector<8x128xf32>,
    } else {
    }
    %c0 = arith.constant 0 : index
    %c0_1 = arith.constant 0 : index
    %3 = vector.load %arg3[%c0, %c0_1] : memref<512x32xbf16, #tpu.memory_space<vmem>>, vector<512x32xbf16>
    %c0_2 = arith.constant 0 : index
    %c0_3 = arith.constant 0 : index
    %4 = vector.load %arg4[%c0_2, %c0_3] : memref<32x128xbf16, #tpu.memory_space<vmem>>, vector<32x128xbf16>
    %c0_4 = arith.constant 0 : index
    %c0_5 = arith.constant 0 : index
    %5 = vector.load %arg5[%c0_4, %c0_5] : memref<1x128xf32, #tpu.memory_space<vmem>>, vector<1x128xf32>
    %cst = arith.constant dense<0.000000e+00> : vector<512x128xf32>
    %6 = tpu.matmul %3, %4, %cst {dimension_numbers = #tpu.dot_dimension_numbers<[1], [0], [0], [1], [0, 0, 1, 1], [], []>} : vector<512x32xbf16>, vector<32x128xbf16>, vector<512x128xf32> -> vector<512x128xf32>
    %7 = vector.broadcast %5 : vector<1x128xf32> to vector<512x128xf32>
    %8 = arith.addf %6, %7 : vector<512x128xf32>
    %9 = arith.negf %8 : vector<512x128xf32>
    %10 = math.exp %9 : vector<512x128xf32>
    %cst_6 = arith.constant 1.000000e+00 : f32
    %11 = vector.broadcast %cst_6 : f32 to vector<512x128xf32>
    %12 = arith.addf %11, %10 : vector<512x128xf32>
    %13 = arith.divf %11, %12 : vector<512x128xf32>
    %14 = arith.mulf %8, %13 : vector<512x128xf32>
    %15 = arith.truncf %14 : vector<512x128xf32> to vector<512x128xbf16>
    %c0_7 = arith.constant 0 : index
    %c0_8 = arith.constant 0 : index
    %16 = vector.load %arg6[%c0_7, %c0_8] : memref<128x128xbf16, #tpu.memory_space<vmem>>, vector<128x128xbf16>
    %c0_9 = arith.constant 0 : index
    %c0_10 = arith.constant 0 : index
    %17 = vector.load %arg7[%c0_9, %c0_10] : memref<1x128xf32, #tpu.memory_space<vmem>>, vector<1x128xf32>
    %cst_11 = arith.constant dense<0.000000e+00> : vector<512x128xf32>
    %18 = tpu.matmul %15, %16, %cst_11 {dimension_numbers = #tpu.dot_dimension_numbers<[1], [0], [0], [1], [0, 0, 1, 1], [], []>} : vector<512x128xbf16>, vector<128x128xbf16>, vector<512x128xf32> -> vector<512x128xf32>
    %19 = vector.broadcast %17 : vector<1x128xf32> to vector<512x128xf32>
    %20 = arith.addf %18, %19 : vector<512x128xf32>
    %21 = arith.negf %20 : vector<512x128xf32>
    %22 = math.exp %21 : vector<512x128xf32>
    %cst_12 = arith.constant 1.000000e+00 : f32
    %23 = vector.broadcast %cst_12 : f32 to vector<512x128xf32>
    %24 = arith.addf %23, %22 : vector<512x128xf32>
    %25 = arith.divf %23, %24 : vector<512x128xf32>
    %26 = arith.mulf %20, %25 : vector<512x128xf32>
    %27 = arith.truncf %26 : vector<512x128xf32> to vector<512x128xbf16>
    %28 = tpu.iota {dimensions = array<i32: 0>} : vector<8x512xi32>
    %c0_13 = arith.constant 0 : index
    %c0_14 = arith.constant 0 : index
    %29 = vector.load %arg2[%c0_13, %c0_14] : memref<1x512xi32, #tpu.memory_space<vmem>>, vector<1x512xi32>
    %30 = vector.broadcast %29 : vector<1x512xi32> to vector<8x512xi32>
    %31 = arith.cmpi eq, %28, %30 : vector<8x512xi32>
    %32 = arith.extui %31 : vector<8x512xi1> to vector<8x512xi32>
    %33 = arith.sitofp %32 : vector<8x512xi32> to vector<8x512xf32>
    %34 = arith.truncf %33 : vector<8x512xf32> to vector<8x512xbf16>
    %c0_15 = arith.constant 0 : index
    %c0_16 = arith.constant 0 : index
    %35 = vector.load %arg10[%c0_15, %c0_16] : memref<8x128xf32, #tpu.memory_space<vmem>>, vector<8x128xf32>
    %cst_17 = arith.constant dense<0.000000e+00> : vector<8x128xf32>
    %36 = tpu.matmul %34, %27, %cst_17 {dimension_numbers = #tpu.dot_dimension_numbers<[1], [0], [0], [1], [0, 0, 1, 1], [], []>} : vector<8x512xbf16>, vector<512x128xbf16>, vector<8x128xf32> -> vector<8x128xf32>
    %37 = arith.addf %35, %36 : vector<8x128xf32>
    %c0_18 = arith.constant 0 : index
    %c0_19 = arith.constant 0 : index
    %38 = vector.load %arg10[%c0_18, %c0_19] : memref<8x128xf32, #tpu.memory_space<vmem>>, vector<8x128xf32>
    tpu.vector_store %arg10[%c0_18, %c0_19], %37 {strides = array<i32>} : memref<8x128xf32, #tpu.memory_space<vmem>>, vector<8x128xf32>,
    %c0_i32_20 = arith.constant 0 : i32
    %39 = arith.cmpi eq, %arg1, %c0_i32_20 : i32
    %40 = arith.extui %39 : i1 to i32
    %c0_i32_21 = arith.constant 0 : i32
    %41 = arith.cmpi ne, %40, %c0_i32_21 : i32
    scf.if %41 {
      %c0_22 = arith.constant 0 : index
      %c0_23 = arith.constant 0 : index
      %42 = vector.load %arg8[%c0_22, %c0_23] : memref<1x128xf32, #tpu.memory_space<vmem>>, vector<1x128xf32>
      %c0_24 = arith.constant 0 : index
      %c0_25 = arith.constant 0 : index
      %43 = vector.load %arg10[%c0_24, %c0_25] : memref<8x128xf32, #tpu.memory_space<vmem>>, vector<8x128xf32>
      %cst_26 = arith.constant dense<0.000000e+00> : vector<1x8xf32>
      %44 = tpu.matmul %42, %43, %cst_26 {dimension_numbers = #tpu.dot_dimension_numbers<[1], [1], [0], [0], [0, 0, 1, 0], [], []>} : vector<1x128xf32>, vector<8x128xf32>, vector<1x8xf32> -> vector<1x8xf32>
      %c0_27 = arith.constant 0 : index
      %c0_28 = arith.constant 0 : index
      %c0_29 = arith.constant 0 : index
      %45 = vector.load %arg9[%c0_27, %c0_28, %c0_29] : memref<1x1x8xf32, #tpu.memory_space<vmem>>, vector<1x1x8xf32>
      %46 = vector.shape_cast %45 : vector<1x1x8xf32> to vector<1x8xf32>
      %47 = vector.shape_cast %44 : vector<1x8xf32> to vector<1x1x8xf32>
      tpu.vector_store %arg9[%c0_27, %c0_28, %c0_29], %47 {strides = array<i32>} : memref<1x1x8xf32, #tpu.memory_space<vmem>>, vector<1x1x8xf32>,
    } else {
    }
    return
  }
  func.func @transform_0(%arg0: i32, %arg1: i32) -> (i32, i32) {
    %c1_i32 = arith.constant 1 : i32
    %0 = arith.muli %arg0, %c1_i32 : i32
    %1 = arith.addi %0, %arg1 : i32
    %c0_i32 = arith.constant 0 : i32
    %c0_i32_0 = arith.constant 0 : i32
    return %c0_i32, %1 : i32, i32
  }
  func.func @transform_1(%arg0: i32, %arg1: i32) -> (i32, i32) {
    %c1_i32 = arith.constant 1 : i32
    %0 = arith.muli %arg0, %c1_i32 : i32
    %1 = arith.addi %0, %arg1 : i32
    %c0_i32 = arith.constant 0 : i32
    %c0_i32_0 = arith.constant 0 : i32
    return %1, %c0_i32 : i32, i32
  }
  func.func @transform_2(%arg0: i32, %arg1: i32) -> (i32, i32) {
    %c0_i32 = arith.constant 0 : i32
    %c0_i32_0 = arith.constant 0 : i32
    %c0_i32_1 = arith.constant 0 : i32
    return %c0_i32, %c0_i32_0 : i32, i32
  }
  func.func @transform_3(%arg0: i32, %arg1: i32) -> (i32, i32) {
    %c0_i32 = arith.constant 0 : i32
    %c0_i32_0 = arith.constant 0 : i32
    %c0_i32_1 = arith.constant 0 : i32
    return %c0_i32, %c0_i32_0 : i32, i32
  }
  func.func @transform_4(%arg0: i32, %arg1: i32) -> (i32, i32) {
    %c0_i32 = arith.constant 0 : i32
    %c0_i32_0 = arith.constant 0 : i32
    %c0_i32_1 = arith.constant 0 : i32
    return %c0_i32, %c0_i32_0 : i32, i32
  }
  func.func @transform_5(%arg0: i32, %arg1: i32) -> (i32, i32) {
    %c0_i32 = arith.constant 0 : i32
    %c0_i32_0 = arith.constant 0 : i32
    %c0_i32_1 = arith.constant 0 : i32
    return %c0_i32, %c0_i32_0 : i32, i32
  }
  func.func @transform_6(%arg0: i32, %arg1: i32) -> (i32, i32) {
    %c0_i32 = arith.constant 0 : i32
    %c0_i32_0 = arith.constant 0 : i32
    %c0_i32_1 = arith.constant 0 : i32
    return %c0_i32, %c0_i32_0 : i32, i32
  }
  func.func @transform_7(%arg0: i32, %arg1: i32) -> (i32, i32, i32) {
    %c0_i32 = arith.constant 0 : i32
    %c0_i32_0 = arith.constant 0 : i32
    %c0_i32_1 = arith.constant 0 : i32
    return %arg0, %c0_i32, %c0_i32_0 : i32, i32, i32
  }
}

</mosaic_0001>

<bundles_post_ra>
// kernel: tpu_custom_call.1
= control target key start
LH: loop header
LB: loop body
LE: loop exit
PB: predicated region body
PF: predicated region fallthrough
CT: control target
= control target key end

     0   :  { %12 = vsyncpa [#allocation4], 0  ;;  %s4834_s0 = inlined_call_operand.vmem [shape: s32[1,1024], index: 0, kind: input, shape index: {}]   ;;  %s4835_s1 = inlined_call_operand.vmem [shape: bf16[1024,32], index: 1, kind: input, shape index: {}]   ;;  %s4836_s2 = inlined_call_operand.vmem [shape: bf16[32,128], index: 2, kind: input, shape index: {}]   ;;  %s4837_s3 = inlined_call_operand.vmem [shape: f32[1,128], index: 3, kind: input, shape index: {}]   ;;  %s4838_s4 = inlined_call_operand.vmem [shape: bf16[128,128], index: 4, kind: input, shape index: {}]   ;;  %s4839_s5 = inlined_call_operand.vmem [shape: f32[1,128], index: 5, kind: input, shape index: {}]   ;;  %s4840_s6 = inlined_call_operand.vmem [shape: f32[1,128], index: 6, kind: input, shape index: {}]   ;;  %s4841_s7 = inlined_call_operand.hbm [shape: f32[2,1,8], index: 7, kind: output, shape index: {}]  }
   0x1   :  { %14 = vsyncpa [#allocation4 + $0x1], 0  ;;  %s3800_s24 = smov 0   ;;  %s3802_s25 = smov 0  }
   0x2   :  { %s3804_s26 = smov 0   ;;  %s3806_s27 = smov 0  }
   0x3   :  { %s3808_s28 = smov 0   ;;  %s3810_s29 = smov 0  }
   0x4 LB: > { %s2562_s30 = sadd.s32 4294967295, %s3754_s29   ;;  %s2563_s8 = sadd.s32 4294967294, %s3754_s29   ;;  %s3754_s29 = sphi %s3810_s29, %s20_s29   ;;  %s3750_s28 = sphi %s3808_s28, %s4850_s28   ;;  %s3746_s27 = sphi %s3806_s27, %s4849_s27   ;;  %s3742_s26 = sphi %s3804_s26, %s4848_s26   ;;  %s3738_s25 = sphi %s3802_s25, %s4847_s25   ;;  %s3734_s24 = sphi %s3800_s24, %s4846_s24  }
   0x5   : > { %s32_s9 = sadd.s32 1, %s3750_s28  ;;  %s200_s10 = sadd.s32 1, %s3742_s26 }
   0x6   : > { %p34_p0 = scmp.ge.s32.totalorder %s32_s9, 2  ;;  %p210_p1 = scmp.ne.s32.totalorder %s3742_s26, %s3738_s25 }
   0x7   : > { %p211_p2 = scmp.eq.s32.totalorder %s2562_s30, 1  ;;  %p216_p3 = scmp.ne.s32.totalorder %s3738_s25, %s3734_s24 }
   0x8   : > { %s4852_s9 = smov (%p34_p0, %s32_s9), 0  ;;  %p217_p5 = scmp.eq.s32.totalorder %s2563_s8, 1 }
   0x9   : > { %p3840_p4 = por %p211_p2, %p210_p1  ;;  %s197_s12 = ssub.s32 %s3750_s28, %s4852_s9 }
   0xa   : > { %p2566_p6 = scmp.ge.s32.totalorder %s3754_s29, 1  ;;  %p198_p7 = scmp.eq.s32.totalorder %s197_s12, 0 }
   0xb   : > { %p3847_p8 = por %p217_p5, %p216_p3  ;;  %p271_p9 = scmp.lt.s32.totalorder %s3754_s29, 3 }
   0xc   : > { %s3853_s14 = scalar_select %p198_p7, %s3742_s26, %s200_s10  }
   0xd   : > { %p272_p10 = pnand %p2566_p6, %p271_p9 }
   0xe   : > { %v3120_v0 = vld [vmem:[%s4836_s2] sm:$0xff] (!%p272_p10)   ;;  %s2568_s17 = sshll.u32 (!%p272_p10), %s3746_s27, 6  ;;  %v3121_v1 = vld [vmem:[%s4836_s2 + $0x8] sm:$0xff] (!%p272_p10)   ;;  %vm576_vm0 = vcmask (!%p272_p10), 261120   ;;  %v3156_v31 = vld [vmem:[%s4838_s4 + $0x10] sm:$0xff] (!%p272_p10)   ;;  %vm3758_vm9 = vmmov (!%p272_p10), 0  }
   0xf   : > { %275 = sbr.rel (%p272_p10) target bundleno = 1104 (0x450), region = 48  ;;  %p317_p11 = scmp.lt.s32.totalorder (!%p272_p10), %s2568_s17, 127  ;;  %2909 = vmatprep.subr.bf16.mxu0 (!%p272_p10), %v3120_v0  ;;  %v3154_v27 = vld [vmem:[%s4838_s4] sm:$0xff] (!%p272_p10)   ;;  %v3155_v28 = vld [vmem:[%s4838_s4 + $0x8] sm:$0xff] (!%p272_p10)   ;;  %v3157_v32 = vld [vmem:[%s4838_s4 + $0x18] sm:$0xff] (!%p272_p10)   ;;  %vm2475_vm10 = vcmask (!%p272_p10), 57344  }
  0x10   : > { %2910 = vmatpush3.bf16.msra.mxu0 (!%p272_p10), %v3120_v0  ;;  %2977 = vmatprep.subr.bf16.mxu1 (!%p272_p10), %v3154_v27  ;;  %v3158_v35 = vld [vmem:[%s4838_s4 + $0x20] sm:$0xff] (!%p272_p10)   ;;  %v3159_v36 = vld [vmem:[%s4838_s4 + $0x28] sm:$0xff] (!%p272_p10)   ;;  %v3160_v39 = vld [vmem:[%s4838_s4 + $0x30] sm:$0xff] (!%p272_p10)   ;;  %s306_s16 = sand.u32 (!%p272_p10), 1, %s3738_s25  }
  0x11   : > { %2911 = vmatprep.subr.bf16.mxu0 (!%p272_p10), %v3121_v1  ;;  %2978 = vmatpush3.bf16.msra.mxu1 (!%p272_p10), %v3154_v27  ;;  %v3161_v41 = vld [vmem:[%s4838_s4 + $0x38] sm:$0xff] (!%p272_p10)   ;;  %v3958_v42 = vld [vmem:[%s4837_s3] ss:$0 sm:$0xff] (!%p272_p10)  ;;  %s2478_s22 = scalar_lea.sflag (!%p272_p10), [#allocation4], %s306_s16 }
  0x12   : > { %2979 = vmatprep.subr.bf16.mxu1 (!%p272_p10), %v3155_v28 }
  0x14   : > { %2912 = vmatpush3.bf16.msra.mxu0 (!%p272_p10), %v3121_v1 }
  0x15   : > { %2980 = vmatpush3.bf16.msra.mxu1 (!%p272_p10), %v3155_v28 }
  0x16   : > { %s4854_s17 = smov (!%p317_p11, %s2568_s17), 127  ;;  %2981 = vmatprep.subr.bf16.mxu1 %v3156_v31 }
  0x17   : > { %s2569_s20 = sshll.u32 %s4854_s17, 2  ;;  %s307_s17 = scalar_lea.vmem [#allocation3], %s306_s16 }
  0x18   : > { %s3865_s23 = scalar_lea.vmem %s4835_s1, %s2569_s20  ;;  %s2567_s20 = sshll.u32 %s3746_s27, 2 }
  0x19   : > { %v3122_v2 = vld [vmem:[%s3865_s23] sm:$0xff]   ;;  %v3123_v3 = vld [vmem:[%s3865_s23 + $0x8] sm:$0xff]   ;;  %v3124_v4 = vld [vmem:[%s3865_s23 + $0x10] sm:$0xff]   ;;  %2982 = vmatpush3.bf16.msra.mxu1 %v3156_v31  ;;  %p310_p12 = scmp.lt.s32.totalorder %s2567_s20, 7  ;;  %s2490_s18 = sshll.u32 %s307_s17, 4  ;;  %s4789_s18 = int_to_ptr.vmem [resolvable:$true] %s2490_s18 }
  0x1a   : > { %2913 = vmatprep.mubr.msk.bf16.mxu0 %vm576_vm0, %v3122_v2  ;;  %v3125_v5 = vld [vmem:[%s3865_s23 + $0x18] sm:$0xff]   ;;  %v3126_v6 = vld [vmem:[%s3865_s23 + $0x20] sm:$0xff]   ;;  %v3127_v7 = vld [vmem:[%s3865_s23 + $0x28] sm:$0xff]   ;;  %2983 = vmatprep.subr.bf16.mxu1 %v3157_v32 }
  0x1b   : > { %2914 = vmatmul.mubr.msk.bf16.vlgmr.msra.gmra.mrb[0].mxu0 %vm576_vm0, %v3123_v3  ;;  %v3128_v8 = vld [vmem:[%s3865_s23 + $0x30] sm:$0xff]   ;;  %v3129_v9 = vld [vmem:[%s3865_s23 + $0x38] sm:$0xff]   ;;  %v3130_v10 = vld [vmem:[%s3865_s23 + $0x40] sm:$0xff]   ;;  %s4856_s20 = smov (!%p310_p12, %s2567_s20), 7 }
  0x1c   : > { %2917 = vmatprep.mubr.msk.bf16.mxu0 %vm576_vm0, %v3124_v4  ;;  %v3131_v11 = vld [vmem:[%s3865_s23 + $0x48] sm:$0xff]   ;;  %v3132_v12 = vld [vmem:[%s3865_s23 + $0x50] sm:$0xff]   ;;  %v3133_v13 = vld [vmem:[%s3865_s23 + $0x58] sm:$0xff]   ;;  %s312_s30 = scalar_lea.vmem %s4834_s0, %s4856_s20 }
  0x1d   : > { %v3134_v14 = vld [vmem:[%s3865_s23 + $0x60] sm:$0xff]   ;;  %v3135_v15 = vld [vmem:[%s3865_s23 + $0x68] sm:$0xff]   ;;  %v3136_v16 = vld [vmem:[%s3865_s23 + $0x70] sm:$0xff]   ;;  %2984 = vmatpush3.bf16.msra.mxu1 %v3157_v32 }
  0x1e   : > { %v3137_v17 = vld [vmem:[%s3865_s23 + $0x78] sm:$0xff]   ;;  %v3138_v18 = vld [vmem:[%s3865_s23 + $0x80] sm:$0xff]   ;;  %v3139_v19 = vld [vmem:[%s3865_s23 + $0x88] sm:$0xff]   ;;  %2985 = vmatprep.subr.bf16.mxu1 %v3158_v35 }
  0x1f   : > { %v3140_v20 = vld [vmem:[%s3865_s23 + $0x90] sm:$0xff]   ;;  %v3141_v21 = vld [vmem:[%s3865_s23 + $0x98] sm:$0xff]   ;;  %v3142_v22 = vld [vmem:[%s3865_s23 + $0xa0] sm:$0xff]  }
  0x20   : > { %v3143_v23 = vld [vmem:[%s3865_s23 + $0xa8] sm:$0xff]   ;;  %v3144_v24 = vld [vmem:[%s3865_s23 + $0xb0] sm:$0xff]   ;;  %v3145_v25 = vld [vmem:[%s3865_s23 + $0xb8] sm:$0xff]  }
  0x21   : > { %v3146_v26 = vld [vmem:[%s3865_s23 + $0xc0] sm:$0xff]   ;;  %v3147_v29 = vld [vmem:[%s3865_s23 + $0xc8] sm:$0xff]   ;;  %v3148_v30 = vld [vmem:[%s3865_s23 + $0xd0] sm:$0xff]   ;;  %2986 = vmatpush3.bf16.msra.mxu1 %v3158_v35 }
  0x22   : > { %v3149_v33 = vld [vmem:[%s3865_s23 + $0xd8] sm:$0xff]   ;;  %v3150_v34 = vld [vmem:[%s3865_s23 + $0xe0] sm:$0xff]   ;;  %v3151_v37 = vld [vmem:[%s3865_s23 + $0xe8] sm:$0xff]   ;;  %2987 = vmatprep.subr.bf16.mxu1 %v3159_v36 }
  0x23   : > { %2918 = vmatmul.mubr.msk.bf16.gmra.mrb[4].mxu0 %vm576_vm0, %v3125_v5  ;;  %v3152_v38 = vld [vmem:[%s3865_s23 + $0xf0] sm:$0xff]   ;;  %v3153_v40 = vld [vmem:[%s3865_s23 + $0xf8] sm:$0xff]   ;;  %s2786_s23 = sshll.u32 %s3746_s27, 4  ;;  %s3759_s27 = smov [#allocation3]  }
  0x24   : > { %2921 = vmatprep.mubr.msk.bf16.mxu0 %vm576_vm0, %v3126_v6  ;;  %s4787_s21 = scalar_lea.hbm %s4841_s7, %s2786_s23  ;;  %s3680_s8 = sshll.u32 %s3759_s27, 4  ;;  %s3681_s8 = int_to_ptr.vmem [resolvable:$false] %s3680_s8 }
  0x25   : > { %2988 = vmatpush3.bf16.msra.mxu1 %v3159_v36  ;;  %s3682_s10 = scalar_lea.vmem %s3681_s8, 32  ;;  %p3683_p2 = scmp.lt.s32.totalorder %s4789_s18, %s3681_s8 }
  0x26   : > { %2989 = vmatprep.subr.bf16.mxu1 %v3160_v39 }
  0x29   : > { %2990 = vmatpush3.bf16.msra.mxu1 %v3160_v39 }
  0x2a   : > { %2991 = vmatprep.subr.bf16.mxu1 %v3161_v41 }
  0x2b   : > { %2922 = vmatmul.mubr.msk.bf16.gmra.mrb[8].mxu0 %vm576_vm0, %v3127_v7 }
  0x2c   : > { %2925 = vmatprep.mubr.msk.bf16.mxu0 %vm576_vm0, %v3128_v8 }
  0x2d   : > { %2992 = vmatpush3.bf16.msra.mxu1 %v3161_v41 }
  0x33   : > { %2926 = vmatmul.mubr.msk.bf16.gmra.mrb[12].mxu0 %vm576_vm0, %v3129_v9 }
  0x34   : > { %2929 = vmatprep.mubr.msk.bf16.mxu0 %vm576_vm0, %v3130_v10 }
  0x3b   : > { %2930 = vmatmul.mubr.msk.bf16.gmra.mrb[16].mxu0 %vm576_vm0, %v3131_v11 }
  0x3c   : > { %2933 = vmatprep.mubr.msk.bf16.mxu0 %vm576_vm0, %v3132_v12 }
  0x43   : > { %2934 = vmatmul.mubr.msk.bf16.gmra.mrb[20].mxu0 %vm576_vm0, %v3133_v13 }
  0x44   : > { %2937 = vmatprep.mubr.msk.bf16.mxu0 %vm576_vm0, %v3134_v14 }
  0x4b   : > { %2938 = vmatmul.mubr.msk.bf16.gmra.mrb[24].mxu0 %vm576_vm0, %v3135_v15 }
  0x4c   : > { %2941 = vmatprep.mubr.msk.bf16.mxu0 %vm576_vm0, %v3136_v16 }
  0x53   : > { %2942 = vmatmul.mubr.msk.bf16.gmra.mrb[28].mxu0 %vm576_vm0, %v3137_v17 }
  0x54   : > { %2945 = vmatprep.mubr.msk.bf16.mxu0 %vm576_vm0, %v3138_v18 }
  0x5b   : > { %2946 = vmatmul.mubr.msk.bf16.gmra.mrb[32].mxu0 %vm576_vm0, %v3139_v19 }
  0x5c   : > { %2949 = vmatprep.mubr.msk.bf16.mxu0 %vm576_vm0, %v3140_v20 }
  0x63   : > { %2950 = vmatmul.mubr.msk.bf16.gmra.mrb[36].mxu0 %vm576_vm0, %v3141_v21 }
  0x64   : > { %2953 = vmatprep.mubr.msk.bf16.mxu0 %vm576_vm0, %v3142_v22 }
  0x6b   : > { %2954 = vmatmul.mubr.msk.bf16.gmra.mrb[40].mxu0 %vm576_vm0, %v3143_v23 }
  0x6c   : > { %2957 = vmatprep.mubr.msk.bf16.mxu0 %vm576_vm0, %v3144_v24 }
  0x73   : > { %2958 = vmatmul.mubr.msk.bf16.gmra.mrb[44].mxu0 %vm576_vm0, %v3145_v25 }
  0x74   : > { %2961 = vmatprep.mubr.msk.bf16.mxu0 %vm576_vm0, %v3146_v26 }
  0x7b   : > { %2962 = vmatmul.mubr.msk.bf16.gmra.mrb[48].mxu0 %vm576_vm0, %v3147_v29 }
  0x7c   : > { %2965 = vmatprep.mubr.msk.bf16.mxu0 %vm576_vm0, %v3148_v30 }
  0x83   : > { %2966 = vmatmul.mubr.msk.bf16.gmra.mrb[52].mxu0 %vm576_vm0, %v3149_v33 }
  0x84   : > { %2969 = vmatprep.mubr.msk.bf16.mxu0 %vm576_vm0, %v3150_v34 }
  0x8b   : > { %2970 = vmatmul.mubr.msk.bf16.gmra.mrb[56].mxu0 %vm576_vm0, %v3151_v37 }
  0x8c   : > { %2973 = vmatprep.mubr.msk.bf16.mxu0 %vm576_vm0, %v3152_v38 }
  0x93   : > { %2974 = vmatmul.mubr.msk.bf16.gmra.mrb[60].mxu0 %vm576_vm0, %v3153_v40 }
  0xee   : > { %v2915_v43 = vpop.f32.mrb[0].mxu0 }
  0xef   : > { %v3961_v44 = vadd.f32 %v2915_v43, %v3958_v42  ;;  %v707_v45 = vpop.f32.mrb[1].mxu0 }
  0xf0   : > { %v3964_v46 = vadd.f32 %v3958_v42, %v707_v45  ;;  %v2916_v47 = vpop.f32.mrb[2].mxu0 }
  0xf1   : > { %v2639_v48 = vmul.f32 -1.442695, %v3961_v44  ;;  %v3968_v49 = vadd.f32 %v2916_v47, %v3958_v42  ;;  %v710_v50 = vpop.f32.mrb[3].mxu0 }
  0xf2   : > { %v2637_v51 = vmul.f32 -1.442695, %v3964_v46  ;;  %v3972_v52 = vadd.f32 %v3958_v42, %v710_v50 }
  0xf3   : > { %3162 = vpow2.f32 %v2639_v48  ;;  %v2640_v53 = vmul.f32 -1.442695, %v3968_v49 }
  0xf4   : > { %3164 = vpow2.f32 %v2637_v51  ;;  %v2638_v54 = vmul.f32 -1.442695, %v3972_v52 }
  0xf5   : > { %3166 = vpow2.f32 %v2640_v53 }
  0xf6   : > { %3168 = vpow2.f32 %v2638_v54  ;;  %v2919_v55 = vpop.f32.mrb[4].mxu0 }
  0xf7   : > { %v3977_v56 = vadd.f32 %v2919_v55, %v3958_v42  ;;  %v723_v57 = vpop.f32.mrb[5].mxu0 }
  0xf8   : > { %v3980_v58 = vadd.f32 %v3958_v42, %v723_v57  ;;  %v2920_v59 = vpop.f32.mrb[6].mxu0 }
  0xf9   : > { %v2643_v60 = vmul.f32 -1.442695, %v3977_v56  ;;  %v3984_v61 = vadd.f32 %v2920_v59, %v3958_v42  ;;  %v726_v62 = vpop.f32.mrb[7].mxu0 }
  0xfa   : > { %v2641_v63 = vmul.f32 -1.442695, %v3980_v58  ;;  %v3988_v0 = vadd.f32 %v3958_v42, %v726_v62 }
  0xfb   : > { %3170 = vpow2.f32 %v2643_v60  ;;  %v2644_v1 = vmul.f32 -1.442695, %v3984_v61 }
  0xfc   : > { %3172 = vpow2.f32 %v2641_v63  ;;  %v2642_v2 = vmul.f32 -1.442695, %v3988_v0 }
  0xfd   : > { %v3163_v3 = vpop.eup %3162  ;;  %3174 = vpow2.f32 %v2644_v1 }
  0xfe   : > { %v3165_v4 = vpop.eup %3164  ;;  %v1156_v5 = vadd.f32 1.0, %v3163_v3  ;;  %3176 = vpow2.f32 %v2642_v2  ;;  %v2923_v6 = vpop.f32.mrb[8].mxu0 }
  0xff   : > { %v3167_v7 = vpop.eup %3166  ;;  %v1154_v8 = vadd.f32 1.0, %v3165_v4  ;;  %v3993_v9 = vadd.f32 %v2923_v6, %v3958_v42  ;;  %v739_v10 = vpop.f32.mrb[9].mxu0 }
 0x100   : > { %v3169_v11 = vpop.eup %3168  ;;  %3178 = vrcp.f32 %v1156_v5  ;;  %v1157_v12 = vadd.f32 1.0, %v3167_v7  ;;  %v3996_v13 = vadd.f32 %v3958_v42, %v739_v10  ;;  %v2924_v14 = vpop.f32.mrb[10].mxu0 }
 0x101   : > { %3180 = vrcp.f32 %v1154_v8  ;;  %v1155_v15 = vadd.f32 1.0, %v3169_v11  ;;  %v2647_v16 = vmul.f32 -1.442695, %v3993_v9  ;;  %v4000_v17 = vadd.f32 %v2924_v14, %v3958_v42  ;;  %v742_v18 = vpop.f32.mrb[11].mxu0 }
 0x102   : > { %3182 = vrcp.f32 %v1157_v12  ;;  %v2645_v19 = vmul.f32 -1.442695, %v3996_v13  ;;  %v4004_v20 = vadd.f32 %v3958_v42, %v742_v18 }
 0x103   : > { %3184 = vrcp.f32 %v1155_v15  ;;  %v2648_v21 = vmul.f32 -1.442695, %v4000_v17 }
 0x104   : > { %3186 = vpow2.f32 %v2647_v16  ;;  %v2646_v22 = vmul.f32 -1.442695, %v4004_v20 }
 0x105   : > { %v3171_v23 = vpop.eup %3170  ;;  %3188 = vpow2.f32 %v2645_v19 }
 0x106   : > { %v3173_v24 = vpop.eup %3172  ;;  %v1160_v25 = vadd.f32 1.0, %v3171_v23  ;;  %3190 = vpow2.f32 %v2648_v21  ;;  %v2927_v26 = vpop.f32.mrb[12].mxu0 }
 0x107   : > { %v3175_v27 = vpop.eup %3174  ;;  %v1158_v28 = vadd.f32 1.0, %v3173_v24  ;;  %3192 = vpow2.f32 %v2646_v22  ;;  %v4009_v29 = vadd.f32 %v2927_v26, %v3958_v42  ;;  %v755_v30 = vpop.f32.mrb[13].mxu0 }
 0x108   : > { %v3177_v31 = vpop.eup %3176  ;;  %3194 = vrcp.f32 %v1160_v25  ;;  %v1161_v32 = vadd.f32 1.0, %v3175_v27  ;;  %v4012_v33 = vadd.f32 %v3958_v42, %v755_v30  ;;  %v2928_v34 = vpop.f32.mrb[14].mxu0 }
 0x109   : > { %3196 = vrcp.f32 %v1158_v28  ;;  %v1159_v35 = vadd.f32 1.0, %v3177_v31  ;;  %v2651_v36 = vmul.f32 -1.442695, %v4009_v29  ;;  %v4016_v37 = vadd.f32 %v2928_v34, %v3958_v42  ;;  %v758_v38 = vpop.f32.mrb[15].mxu0 }
 0x10a   : > { %v3179_v39 = vpop.eup %3178  ;;  %3198 = vrcp.f32 %v1161_v32  ;;  %v2649_v40 = vmul.f32 -1.442695, %v4012_v33  ;;  %v4020_v41 = vadd.f32 %v3958_v42, %v758_v38 }
 0x10b   : > { %v3181_v43 = vpop.eup %3180  ;;  %3200 = vrcp.f32 %v1159_v35  ;;  %v2652_v45 = vmul.f32 -1.442695, %v4016_v37  ;;  %v1348_v51 = vmul.f32 %v3179_v39, %v3961_v44 }
 0x10c   : > { %v3183_v47 = vpop.eup %3182  ;;  %3202 = vpow2.f32 %v2651_v36  ;;  %v2650_v48 = vmul.f32 -1.442695, %v4020_v41  ;;  %v1346_v57 = vmul.f32 %v3181_v43, %v3964_v46 }
 0x10d   : > { %v3185_v50 = vpop.eup %3184  ;;  %v1349_v53 = vmul.f32 %v3183_v47, %v3968_v49  ;;  %3204 = vpow2.f32 %v2649_v40 }
 0x10e   : > { %v3187_v54 = vpop.eup %3186  ;;  %3206 = vpow2.f32 %v2652_v45  ;;  %v2931_v55 = vpop.f32.mrb[16].mxu0  ;;  %v1347_v59 = vmul.f32 %v3185_v50, %v3972_v52 }
 0x10f   : > { %v3189_v60 = vpop.eup %3188  ;;  %v1164_v62 = vadd.f32 1.0, %v3187_v54  ;;  %3208 = vpow2.f32 %v2650_v48  ;;  %v4029_v63 = vadd.f32 %v2931_v55, %v3958_v42  ;;  %v771_v1 = vpop.f32.mrb[17].mxu0  ;;  %v1411_v2 = vpack.c.bf16 %v1349_v53, %v1348_v51 }
 0x110   : > { %v3191_v3 = vpop.eup %3190  ;;  %v1162_v44 = vadd.f32 1.0, %v3189_v60  ;;  %v4032_v49 = vadd.f32 %v3958_v42, %v771_v1  ;;  %v2932_v4 = vpop.f32.mrb[18].mxu0  ;;  %v1410_v5 = vpack.c.bf16 %v1347_v59, %v1346_v57 }
 0x111   : > { %v3193_v6 = vpop.eup %3192  ;;  %3210 = vrcp.f32 %v1164_v62  ;;  %v1165_v46 = vadd.f32 1.0, %v3191_v3  ;;  %v2655_v52 = vmul.f32 -1.442695, %v4029_v63  ;;  %v4036_v7 = vadd.f32 %v2932_v4, %v3958_v42  ;;  %v774_v8 = vpop.f32.mrb[19].mxu0 }
 0x112   : > { %v3195_v10 = vpop.eup %3194  ;;  %3212 = vrcp.f32 %v1162_v44  ;;  %v1163_v11 = vadd.f32 1.0, %v3193_v6  ;;  %v2653_v12 = vmul.f32 -1.442695, %v4032_v49  ;;  %v4040_v14 = vadd.f32 %v3958_v42, %v774_v8  ;;  %2993 = vmatprep.mubr.bf16.mxu1 %v1410_v5 }
 0x113   : > { %v3197_v15 = vpop.eup %3196  ;;  %3214 = vrcp.f32 %v1165_v46  ;;  %v2656_v16 = vmul.f32 -1.442695, %v4036_v7  ;;  %2994 = vmatmul.mubr.bf16.vlgmr.msra.gmra.mrb[0].mxu1 %v1411_v2  ;;  %v1352_v22 = vmul.f32 %v3195_v10, %v3977_v56 }
 0x114   : > { %v3199_v18 = vpop.eup %3198  ;;  %3216 = vrcp.f32 %v1163_v11  ;;  %v2654_v19 = vmul.f32 -1.442695, %v4040_v14  ;;  %v1350_v25 = vmul.f32 %v3197_v15, %v3980_v58 }
 0x115   : > { %v3201_v21 = vpop.eup %3200  ;;  %v1353_v23 = vmul.f32 %v3199_v18, %v3984_v61  ;;  %3218 = vpow2.f32 %v2655_v52 }
 0x116   : > { %v3203_v24 = vpop.eup %3202  ;;  %v1351_v26 = vmul.f32 %v3201_v21, %v3988_v0  ;;  %3220 = vpow2.f32 %v2653_v12  ;;  %v2935_v27 = vpop.f32.mrb[20].mxu0 }
 0x117   : > { %v3205_v28 = vpop.eup %3204  ;;  %v1168_v30 = vadd.f32 1.0, %v3203_v24  ;;  %3222 = vpow2.f32 %v2656_v16  ;;  %v4049_v31 = vadd.f32 %v2935_v27, %v3958_v42  ;;  %v787_v32 = vpop.f32.mrb[21].mxu0  ;;  %v1413_v34 = vpack.c.bf16 %v1353_v23, %v1352_v22 }
 0x118   : > { %v3207_v35 = vpop.eup %3206  ;;  %v1166_v56 = vadd.f32 1.0, %v3205_v28  ;;  %3224 = vpow2.f32 %v2654_v19  ;;  %v4052_v61 = vadd.f32 %v3958_v42, %v787_v32  ;;  %v2936_v36 = vpop.f32.mrb[22].mxu0  ;;  %v1412_v58 = vpack.c.bf16 %v1351_v26, %v1350_v25 }
 0x119   : > { %v3209_v38 = vpop.eup %3208  ;;  %3226 = vrcp.f32 %v1168_v30  ;;  %v1169_v0 = vadd.f32 1.0, %v3207_v35  ;;  %v2659_v39 = vmul.f32 -1.442695, %v4049_v31  ;;  %v4056_v40 = vadd.f32 %v2936_v36, %v3958_v42  ;;  %v790_v43 = vpop.f32.mrb[23].mxu0 }
 0x11a   : > { %3228 = vrcp.f32 %v1166_v56  ;;  %v1167_v45 = vadd.f32 1.0, %v3209_v38  ;;  %v2657_v47 = vmul.f32 -1.442695, %v4052_v61  ;;  %v4060_v48 = vadd.f32 %v3958_v42, %v790_v43  ;;  %2997 = vmatprep.mubr.bf16.mxu1 %v1412_v58 }
 0x11b   : > { %v3211_v50 = vpop.eup %3210  ;;  %3230 = vrcp.f32 %v1169_v0  ;;  %v2660_v51 = vmul.f32 -1.442695, %v4056_v40  ;;  %2998 = vmatmul.mubr.bf16.gmra.mrb[4].mxu1 %v1413_v34 }
 0x11c   : > { %v3213_v53 = vpop.eup %3212  ;;  %3232 = vrcp.f32 %v1167_v45  ;;  %v2658_v54 = vmul.f32 -1.442695, %v4060_v48  ;;  %v1356_v59 = vmul.f32 %v3211_v50, %v3993_v9 }
 0x11d   : > { %v3215_v55 = vpop.eup %3214  ;;  %3234 = vpow2.f32 %v2659_v39  ;;  %v1354_v2 = vmul.f32 %v3213_v53, %v3996_v13 }
 0x11e   : > { %v3217_v57 = vpop.eup %3216  ;;  %v1357_v60 = vmul.f32 %v3215_v55, %v4000_v17  ;;  %3236 = vpow2.f32 %v2657_v47  ;;  %v2939_v62 = vpop.f32.mrb[24].mxu0 }
 0x11f   : > { %v3219_v1 = vpop.eup %3218  ;;  %v1355_v3 = vmul.f32 %v3217_v57, %v4004_v20  ;;  %3238 = vpow2.f32 %v2660_v51  ;;  %v4069_v44 = vadd.f32 %v2939_v62, %v3958_v42  ;;  %v803_v4 = vpop.f32.mrb[25].mxu0 }
 0x120   : > { %v3221_v5 = vpop.eup %3220  ;;  %v1172_v6 = vadd.f32 1.0, %v3219_v1  ;;  %3240 = vpow2.f32 %v2658_v54  ;;  %v4072_v46 = vadd.f32 %v3958_v42, %v803_v4  ;;  %v2940_v9 = vpop.f32.mrb[26].mxu0  ;;  %v1415_v17 = vpack.c.bf16 %v1357_v60, %v1356_v59 }
 0x121   : > { %v3223_v52 = vpop.eup %3222  ;;  %v1170_v8 = vadd.f32 1.0, %v3221_v5  ;;  %v4075_v10 = vadd.f32 %v2940_v9, %v3958_v42  ;;  %v806_v13 = vpop.f32.mrb[27].mxu0  ;;  %v1414_v20 = vpack.c.bf16 %v1355_v3, %v1354_v2  ;;  %v2663_v15 = vmul.f32 -1.442695, %v4069_v44 }
 0x122   : > { %v3225_v11 = vpop.eup %3224  ;;  %3242 = vrcp.f32 %v1172_v6  ;;  %v1173_v12 = vadd.f32 1.0, %v3223_v52  ;;  %v4079_v16 = vadd.f32 %v3958_v42, %v806_v13  ;;  %v2661_v21 = vmul.f32 -1.442695, %v4072_v46 }
 0x123   : > { %v3227_v18 = vpop.eup %3226  ;;  %3244 = vrcp.f32 %v1170_v8  ;;  %v1171_v19 = vadd.f32 1.0, %v3225_v11  ;;  %3001 = vmatprep.mubr.bf16.mxu1 %v1414_v20  ;;  %v2664_v23 = vmul.f32 -1.442695, %v4075_v10 }
 0x124   : > { %v3229_v22 = vpop.eup %3228  ;;  %3246 = vrcp.f32 %v1173_v12  ;;  %3002 = vmatmul.mubr.bf16.gmra.mrb[8].mxu1 %v1415_v17  ;;  %v2662_v25 = vmul.f32 -1.442695, %v4079_v16  ;;  %v1360_v27 = vmul.f32 %v3227_v18, %v4009_v29 }
 0x125   : > { %v3231_v24 = vpop.eup %3230  ;;  %3248 = vrcp.f32 %v1171_v19 }
 0x126   : > { %v3233_v26 = vpop.eup %3232  ;;  %v1361_v28 = vmul.f32 %v3231_v24, %v4016_v37  ;;  %3250 = vpow2.f32 %v2663_v15  ;;  %v2943_v30 = vpop.f32.mrb[28].mxu0  ;;  %v1358_v37 = vmul.f32 %v3229_v22, %v4012_v33 }
 0x127   : > { %v3235_v32 = vpop.eup %3234  ;;  %v1359_v34 = vmul.f32 %v3233_v26, %v4020_v41  ;;  %3252 = vpow2.f32 %v2661_v21  ;;  %v4088_v35 = vadd.f32 %v2943_v30, %v3958_v42  ;;  %v819_v56 = vpop.f32.mrb[29].mxu0 }
 0x128   : > { %v3237_v36 = vpop.eup %3236  ;;  %v1176_v58 = vadd.f32 1.0, %v3235_v32  ;;  %3254 = vpow2.f32 %v2664_v23  ;;  %v4091_v38 = vadd.f32 %v3958_v42, %v819_v56  ;;  %v2944_v0 = vpop.f32.mrb[30].mxu0  ;;  %v1417_v29 = vpack.c.bf16 %v1361_v28, %v1360_v27 }
 0x129   : > { %v3239_v39 = vpop.eup %3238  ;;  %v1174_v43 = vadd.f32 1.0, %v3237_v36  ;;  %3256 = vpow2.f32 %v2662_v25  ;;  %v4095_v41 = vadd.f32 %v2944_v0, %v3958_v42  ;;  %v822_v45 = vpop.f32.mrb[31].mxu0  ;;  %v2667_v51 = vmul.f32 -1.442695, %v4088_v35 }
 0x12a   : > { %v3241_v47 = vpop.eup %3240  ;;  %3258 = vrcp.f32 %v1176_v58  ;;  %v1177_v50 = vadd.f32 1.0, %v3239_v39  ;;  %v4099_v53 = vadd.f32 %v3958_v42, %v822_v45  ;;  %v2665_v55 = vmul.f32 -1.442695, %v4091_v38 }
 0x12b   : > { %3260 = vrcp.f32 %v1174_v43  ;;  %v1175_v54 = vadd.f32 1.0, %v3241_v47  ;;  %v1416_v57 = vpack.c.bf16 %v1359_v34, %v1358_v37  ;;  %v2668_v59 = vmul.f32 -1.442695, %v4095_v41 }
 0x12c   : > { %v3243_v33 = vpop.eup %3242  ;;  %3262 = vrcp.f32 %v1177_v50  ;;  %v2666_v62 = vmul.f32 -1.442695, %v4099_v53 }
 0x12d   : > { %v3245_v60 = vpop.eup %3244  ;;  %3264 = vrcp.f32 %v1175_v54  ;;  %3005 = vmatprep.mubr.bf16.mxu1 %v1416_v57  ;;  %v1364_v11 = vmul.f32 %v3243_v33, %v4029_v63 }
 0x12e   : > { %v3247_v1 = vpop.eup %3246  ;;  %3266 = vpow2.f32 %v2667_v51  ;;  %3006 = vmatmul.mubr.bf16.gmra.mrb[12].mxu1 %v1417_v29  ;;  %v2947_v2 = vpop.f32.mrb[32].mxu0  ;;  %v1362_v17 = vmul.f32 %v3245_v60, %v4032_v49 }
 0x12f   : > { %v3249_v3 = vpop.eup %3248  ;;  %v1365_v4 = vmul.f32 %v3247_v1, %v4036_v7  ;;  %3268 = vpow2.f32 %v2665_v55  ;;  %v4106_v5 = vadd.f32 %v2947_v2, %v3958_v42  ;;  %v835_v6 = vpop.f32.mrb[33].mxu0 }
 0x130   : > { %v3251_v9 = vpop.eup %3250  ;;  %v1363_v52 = vmul.f32 %v3249_v3, %v4040_v14  ;;  %3270 = vpow2.f32 %v2668_v59  ;;  %v4111_v8 = vadd.f32 %v3958_v42, %v835_v6  ;;  %v2948_v13 = vpop.f32.mrb[34].mxu0 }
 0x131   : > { %v3253_v20 = vpop.eup %3252  ;;  %v1180_v12 = vadd.f32 1.0, %v3251_v9  ;;  %3272 = vpow2.f32 %v2666_v62  ;;  %v4115_v7 = vadd.f32 %v2948_v13, %v3958_v42  ;;  %v838_v15 = vpop.f32.mrb[35].mxu0  ;;  %v2671_v23 = vmul.f32 -1.442695, %v4106_v5 }
 0x132   : > { %v3255_v18 = vpop.eup %3254  ;;  %v1178_v19 = vadd.f32 1.0, %v3253_v20  ;;  %v4118_v49 = vadd.f32 %v3958_v42, %v838_v15  ;;  %v1418_v14 = vpack.c.bf16 %v1363_v52, %v1362_v17  ;;  %v1419_v24 = vpack.c.bf16 %v1365_v4, %v1364_v11 }
 0x133   : > { %v3257_v21 = vpop.eup %3256  ;;  %3274 = vrcp.f32 %v1180_v12  ;;  %v1181_v22 = vadd.f32 1.0, %v3255_v18  ;;  %v2669_v26 = vmul.f32 -1.442695, %v4111_v8  ;;  %v2672_v28 = vmul.f32 -1.442695, %v4115_v7 }
 0x134   : > { %v3259_v25 = vpop.eup %3258  ;;  %3276 = vrcp.f32 %v1178_v19  ;;  %v1179_v63 = vadd.f32 1.0, %v3257_v21  ;;  %3009 = vmatprep.mubr.bf16.mxu1 %v1418_v14  ;;  %v2670_v32 = vmul.f32 -1.442695, %v4118_v49 }
 0x135   : > { %v3261_v27 = vpop.eup %3260  ;;  %3278 = vrcp.f32 %v1181_v22  ;;  %v1368_v57 = vmul.f32 %v3259_v25, %v4049_v31 }
 0x136   : > { %v3263_v30 = vpop.eup %3262  ;;  %3280 = vrcp.f32 %v1179_v63  ;;  %3010 = vmatmul.mubr.bf16.gmra.mrb[16].mxu1 %v1419_v24  ;;  %v2951_v34 = vpop.f32.mrb[36].mxu0  ;;  %v1366_v47 = vmul.f32 %v3261_v27, %v4052_v61 }
 0x137   : > { %v3265_v56 = vpop.eup %3264  ;;  %3282 = vpow2.f32 %v2671_v23  ;;  %v4125_v36 = vadd.f32 %v2951_v34, %v3958_v42  ;;  %v851_v58 = vpop.f32.mrb[37].mxu0  ;;  %v1369_v29 = vmul.f32 %v3263_v30, %v4056_v40 }
 0x138   : > { %v3267_v0 = vpop.eup %3266  ;;  %v1367_v39 = vmul.f32 %v3265_v56, %v4060_v48  ;;  %3284 = vpow2.f32 %v2669_v26  ;;  %v4130_v37 = vadd.f32 %v3958_v42, %v851_v58  ;;  %v2952_v43 = vpop.f32.mrb[38].mxu0 }
 0x139   : > { %v3269_v45 = vpop.eup %3268  ;;  %v1184_v50 = vadd.f32 1.0, %v3267_v0  ;;  %3286 = vpow2.f32 %v2672_v28  ;;  %v4134_v51 = vadd.f32 %v2952_v43, %v3958_v42  ;;  %v854_v54 = vpop.f32.mrb[39].mxu0  ;;  %v2675_v60 = vmul.f32 -1.442695, %v4125_v36 }
 0x13a   : > { %v3271_v55 = vpop.eup %3270  ;;  %v1182_v40 = vadd.f32 1.0, %v3269_v45  ;;  %3288 = vpow2.f32 %v2670_v32  ;;  %v4138_v48 = vadd.f32 %v3958_v42, %v854_v54  ;;  %v1420_v61 = vpack.c.bf16 %v1367_v39, %v1366_v47 }
 0x13b   : > { %v3273_v33 = vpop.eup %3272  ;;  %3290 = vrcp.f32 %v1184_v50  ;;  %v1185_v59 = vadd.f32 1.0, %v3271_v55  ;;  %v2673_v1 = vmul.f32 -1.442695, %v4130_v37  ;;  %v1421_v2 = vpack.c.bf16 %v1369_v29, %v1368_v57 }
 0x13c   : > { %3292 = vrcp.f32 %v1182_v40  ;;  %v1183_v62 = vadd.f32 1.0, %v3273_v33  ;;  %v2676_v31 = vmul.f32 -1.442695, %v4134_v51  ;;  %3013 = vmatprep.mubr.bf16.mxu1 %v1420_v61  ;;  %v2674_v6 = vmul.f32 -1.442695, %v4138_v48 }
 0x13d   : > { %v3275_v3 = vpop.eup %3274  ;;  %3294 = vrcp.f32 %v1185_v59 }
 0x13e   : > { %v3277_v4 = vpop.eup %3276  ;;  %3296 = vrcp.f32 %v1183_v62  ;;  %3014 = vmatmul.mubr.bf16.gmra.mrb[20].mxu1 %v1421_v2  ;;  %v2955_v9 = vpop.f32.mrb[40].mxu0 }
 0x13f   : > { %v3279_v17 = vpop.eup %3278  ;;  %3298 = vpow2.f32 %v2675_v60  ;;  %v4145_v52 = vadd.f32 %v2955_v9, %v3958_v42  ;;  %v867_v13 = vpop.f32.mrb[41].mxu0  ;;  %v1370_v11 = vmul.f32 %v3277_v4, %v4072_v46  ;;  %v1372_v46 = vmul.f32 %v3275_v3, %v4069_v44 }
 0x140   : > { %v3281_v20 = vpop.eup %3280  ;;  %v1373_v12 = vmul.f32 %v3279_v17, %v4075_v10  ;;  %3300 = vpow2.f32 %v2673_v1  ;;  %v4150_v15 = vadd.f32 %v3958_v42, %v867_v13  ;;  %v2956_v18 = vpop.f32.mrb[42].mxu0 }
 0x141   : > { %v3283_v19 = vpop.eup %3282  ;;  %v1371_v14 = vmul.f32 %v3281_v20, %v4079_v16  ;;  %3302 = vpow2.f32 %v2676_v31  ;;  %v2679_v21 = vmul.f32 -1.442695, %v4145_v52  ;;  %v4155_v22 = vadd.f32 %v2956_v18, %v3958_v42  ;;  %v870_v23 = vpop.f32.mrb[43].mxu0 }
 0x142   : > { %v3285_v24 = vpop.eup %3284  ;;  %v1188_v25 = vadd.f32 1.0, %v3283_v19  ;;  %3304 = vpow2.f32 %v2674_v6  ;;  %v4159_v10 = vadd.f32 %v3958_v42, %v870_v23  ;;  %v2677_v30 = vmul.f32 -1.442695, %v4150_v15 }
 0x143   : > { %v3287_v63 = vpop.eup %3286  ;;  %v1186_v26 = vadd.f32 1.0, %v3285_v24  ;;  %3306 = vpow2.f32 %v2679_v21  ;;  %v1422_v27 = vpack.c.bf16 %v1371_v14, %v1370_v11  ;;  %v1423_v32 = vpack.c.bf16 %v1373_v12, %v1372_v46 }
 0x144   : > { %v3289_v16 = vpop.eup %3288  ;;  %3308 = vrcp.f32 %v1188_v25  ;;  %v1189_v28 = vadd.f32 1.0, %v3287_v63  ;;  %v2680_v44 = vmul.f32 -1.442695, %v4155_v22  ;;  %v2678_v0 = vmul.f32 -1.442695, %v4159_v10 }
 0x145   : > { %v3291_v34 = vpop.eup %3290  ;;  %3310 = vrcp.f32 %v1186_v26  ;;  %v1187_v56 = vadd.f32 1.0, %v3289_v16  ;;  %3017 = vmatprep.mubr.bf16.mxu1 %v1422_v27 }
 0x146   : > { %v3293_v58 = vpop.eup %3292  ;;  %3312 = vrcp.f32 %v1189_v28  ;;  %3018 = vmatmul.mubr.bf16.gmra.mrb[24].mxu1 %v1423_v32  ;;  %v2959_v29 = vpop.f32.mrb[44].mxu0  ;;  %v1376_v62 = vmul.f32 %v3291_v34, %v4088_v35 }
 0x147   : > { %v3295_v39 = vpop.eup %3294  ;;  %3314 = vrcp.f32 %v1187_v56  ;;  %v4165_v43 = vadd.f32 %v2959_v29, %v3958_v42  ;;  %v883_v45 = vpop.f32.mrb[45].mxu0  ;;  %v1374_v50 = vmul.f32 %v3293_v58, %v4091_v38 }
 0x148   : > { %v3297_v47 = vpop.eup %3296  ;;  %v1377_v54 = vmul.f32 %v3295_v39, %v4095_v41  ;;  %3316 = vpow2.f32 %v2677_v30  ;;  %v2960_v55 = vpop.f32.mrb[46].mxu0  ;;  %v4172_v59 = vadd.f32 %v3958_v42, %v883_v45 }
 0x149   : > { %v3299_v57 = vpop.eup %3298  ;;  %v1375_v40 = vmul.f32 %v3297_v47, %v4099_v53  ;;  %3318 = vpow2.f32 %v2680_v44  ;;  %v2683_v33 = vmul.f32 -1.442695, %v4165_v43  ;;  %v886_v60 = vpop.f32.mrb[47].mxu0  ;;  %v4176_v38 = vadd.f32 %v2960_v55, %v3958_v42 }
 0x14a   : > { %v3301_v61 = vpop.eup %3300  ;;  %v1192_v1 = vadd.f32 1.0, %v3299_v57  ;;  %3320 = vpow2.f32 %v2678_v0  ;;  %v4179_v53 = vadd.f32 %v3958_v42, %v886_v60  ;;  %v1425_v6 = vpack.c.bf16 %v1377_v54, %v1376_v62 }
 0x14b   : > { %v3303_v41 = vpop.eup %3302  ;;  %v1190_v2 = vadd.f32 1.0, %v3301_v61  ;;  %3322 = vpow2.f32 %v2683_v33  ;;  %v1424_v3 = vpack.c.bf16 %v1375_v40, %v1374_v50  ;;  %v2681_v35 = vmul.f32 -1.442695, %v4172_v59 }
 0x14c   : > { %v3305_v31 = vpop.eup %3304  ;;  %3324 = vrcp.f32 %v1192_v1  ;;  %v1193_v4 = vadd.f32 1.0, %v3303_v41  ;;  %v2684_v11 = vmul.f32 -1.442695, %v4176_v38  ;;  %v2682_v19 = vmul.f32 -1.442695, %v4179_v53 }
 0x14d   : > { %v3307_v9 = vpop.eup %3306  ;;  %3326 = vrcp.f32 %v1190_v2  ;;  %v1191_v17 = vadd.f32 1.0, %v3305_v31  ;;  %3021 = vmatprep.mubr.bf16.mxu1 %v1424_v3 }
 0x14e   : > { %v3309_v13 = vpop.eup %3308  ;;  %3328 = vrcp.f32 %v1193_v4  ;;  %v1196_v20 = vadd.f32 1.0, %v3307_v9  ;;  %3022 = vmatmul.mubr.bf16.gmra.mrb[28].mxu1 %v1425_v6  ;;  %v2963_v12 = vpop.f32.mrb[48].mxu0 }
 0x14f   : > { %v3311_v18 = vpop.eup %3310  ;;  %3330 = vrcp.f32 %v1191_v17  ;;  %v4185_v14 = vadd.f32 %v2963_v12, %v3958_v42  ;;  %v899_v21 = vpop.f32.mrb[49].mxu0  ;;  %v1380_v24 = vmul.f32 %v3309_v13, %v4106_v5 }
 0x150   : > { %v3313_v23 = vpop.eup %3312  ;;  %3332 = vrcp.f32 %v1196_v20  ;;  %v2964_v46 = vpop.f32.mrb[50].mxu0  ;;  %v4191_v27 = vadd.f32 %v3958_v42, %v899_v21  ;;  %v1378_v30 = vmul.f32 %v3311_v18, %v4111_v8 }
 0x151   : > { %v3315_v25 = vpop.eup %3314  ;;  %v1381_v63 = vmul.f32 %v3313_v23, %v4115_v7  ;;  %3334 = vpow2.f32 %v2681_v35  ;;  %v2687_v26 = vmul.f32 -1.442695, %v4185_v14  ;;  %v902_v16 = vpop.f32.mrb[51].mxu0  ;;  %v4196_v5 = vadd.f32 %v2964_v46, %v3958_v42 }
 0x152   : > { %v3317_v28 = vpop.eup %3316  ;;  %v1379_v32 = vmul.f32 %v3315_v25, %v4118_v49  ;;  %3336 = vpow2.f32 %v2684_v11  ;;  %v4199_v7 = vadd.f32 %v3958_v42, %v902_v16  ;;  %v2685_v49 = vmul.f32 -1.442695, %v4191_v27 }
 0x153   : > { %v3319_v34 = vpop.eup %3318  ;;  %v1194_v56 = vadd.f32 1.0, %v3317_v28  ;;  %3338 = vpow2.f32 %v2682_v19  ;;  %v1427_v44 = vpack.c.bf16 %v1381_v63, %v1380_v24  ;;  %v2688_v50 = vmul.f32 -1.442695, %v4196_v5 }
 0x154   : > { %v3321_v58 = vpop.eup %3320  ;;  %v1197_v0 = vadd.f32 1.0, %v3319_v34  ;;  %3340 = vpow2.f32 %v2687_v26  ;;  %v1426_v29 = vpack.c.bf16 %v1379_v32, %v1378_v30  ;;  %v2686_v57 = vmul.f32 -1.442695, %v4199_v7 }
 0x155   : > { %v3323_v39 = vpop.eup %3322  ;;  %3342 = vrcp.f32 %v1194_v56  ;;  %v1195_v8 = vadd.f32 1.0, %v3321_v58 }
 0x156   : > { %v3325_v45 = vpop.eup %3324  ;;  %3344 = vrcp.f32 %v1197_v0  ;;  %v1200_v47 = vadd.f32 1.0, %v3323_v39  ;;  %3025 = vmatprep.mubr.bf16.mxu1 %v1426_v29  ;;  %v2967_v54 = vpop.f32.mrb[52].mxu0 }
 0x157   : > { %v3327_v55 = vpop.eup %3326  ;;  %3346 = vrcp.f32 %v1195_v8  ;;  %3026 = vmatmul.mubr.bf16.gmra.mrb[32].mxu1 %v1427_v44  ;;  %v4205_v40 = vadd.f32 %v2967_v54, %v3958_v42  ;;  %v915_v33 = vpop.f32.mrb[53].mxu0  ;;  %v1384_v61 = vmul.f32 %v3325_v45, %v4125_v36 }
 0x158   : > { %v3329_v60 = vpop.eup %3328  ;;  %3348 = vrcp.f32 %v1200_v47  ;;  %v4209_v62 = vadd.f32 %v3958_v42, %v915_v33  ;;  %v2968_v1 = vpop.f32.mrb[54].mxu0  ;;  %v1382_v2 = vmul.f32 %v3327_v55, %v4130_v37 }
 0x159   : > { %v3331_v41 = vpop.eup %3330  ;;  %v1385_v3 = vmul.f32 %v3329_v60, %v4134_v51  ;;  %3350 = vpow2.f32 %v2685_v49  ;;  %v2691_v31 = vmul.f32 -1.442695, %v4205_v40  ;;  %v918_v4 = vpop.f32.mrb[55].mxu0  ;;  %v4217_v17 = vadd.f32 %v2968_v1, %v3958_v42 }
 0x15a   : > { %v3333_v6 = vpop.eup %3332  ;;  %v1383_v9 = vmul.f32 %v3331_v41, %v4138_v48  ;;  %3352 = vpow2.f32 %v2688_v50  ;;  %v2689_v36 = vmul.f32 -1.442695, %v4209_v62  ;;  %v4220_v13 = vadd.f32 %v3958_v42, %v918_v4  ;;  %v3674_v50 = vld [vmem:[%s4837_s3] ss:$0 sm:$0xff] }
 0x15b   : > { %v3335_v35 = vpop.eup %3334  ;;  %3354 = vpow2.f32 %v2686_v57  ;;  %v1429_v37 = vpack.c.bf16 %v1385_v3, %v1384_v61  ;;  %v2692_v21 = vmul.f32 -1.442695, %v4217_v17  ;;  %v1388_v34 = vmul.f32 %v3333_v6, %v4145_v52 }
 0x15c   : > { %v3337_v51 = vpop.eup %3336  ;;  %v1198_v20 = vadd.f32 1.0, %v3335_v35  ;;  %3356 = vpow2.f32 %v2691_v31  ;;  %v1428_v11 = vpack.c.bf16 %v1383_v9, %v1382_v2  ;;  %v2690_v25 = vmul.f32 -1.442695, %v4220_v13 }
 0x15d   : > { %v3339_v12 = vpop.eup %3338  ;;  %v1201_v18 = vadd.f32 1.0, %v3337_v51  ;;  %3358 = vpow2.f32 %v2689_v36 }
 0x15e   : > { %v3341_v48 = vpop.eup %3340  ;;  %3360 = vrcp.f32 %v1198_v20  ;;  %v1199_v19 = vadd.f32 1.0, %v3339_v12  ;;  %3029 = vmatprep.mubr.bf16.mxu1 %v1428_v11  ;;  %v2971_v23 = vpop.f32.mrb[56].mxu0 }
 0x15f   : > { %v3343_v24 = vpop.eup %3342  ;;  %3362 = vrcp.f32 %v1201_v18  ;;  %v1204_v46 = vadd.f32 1.0, %v3341_v48  ;;  %3030 = vmatmul.mubr.bf16.gmra.mrb[36].mxu1 %v1429_v37  ;;  %v4225_v63 = vadd.f32 %v2971_v23, %v3958_v42  ;;  %v931_v26 = vpop.f32.mrb[57].mxu0 }
 0x160   : > { %v3345_v16 = vpop.eup %3344  ;;  %3364 = vrcp.f32 %v1199_v19  ;;  %v4228_v28 = vadd.f32 %v3958_v42, %v931_v26  ;;  %v2972_v30 = vpop.f32.mrb[58].mxu0  ;;  %v1386_v29 = vmul.f32 %v3343_v24, %v4150_v15 }
 0x161   : > { %v3347_v32 = vpop.eup %3346  ;;  %v1389_v56 = vmul.f32 %v3345_v16, %v4155_v22  ;;  %3366 = vrcp.f32 %v1204_v46  ;;  %v2695_v44 = vmul.f32 -1.442695, %v4225_v63  ;;  %v934_v58 = vpop.f32.mrb[59].mxu0  ;;  %v4237_v45 = vadd.f32 %v2972_v30, %v3958_v42 }
 0x162   : > { %v3349_v0 = vpop.eup %3348  ;;  %v1387_v39 = vmul.f32 %v3347_v32, %v4159_v10  ;;  %3368 = vpow2.f32 %v2692_v21  ;;  %v2693_v8 = vmul.f32 -1.442695, %v4228_v28  ;;  %v4242_v54 = vadd.f32 %v3674_v50, %v934_v58 }
 0x163   : > { %v3351_v49 = vpop.eup %3350  ;;  %3370 = vpow2.f32 %v2690_v25  ;;  %v1431_v52 = vpack.c.bf16 %v1389_v56, %v1388_v34  ;;  %v2696_v1 = vmul.f32 -1.442695, %v4237_v45  ;;  %v1392_v20 = vmul.f32 %v3349_v0, %v4165_v43 }
 0x164   : > { %v3353_v47 = vpop.eup %3352  ;;  %v1202_v22 = vadd.f32 1.0, %v3351_v49  ;;  %3372 = vpow2.f32 %v2695_v44  ;;  %v1430_v15 = vpack.c.bf16 %v1387_v39, %v1386_v29  ;;  %v2694_v4 = vmul.f32 -1.442695, %v4242_v54 }
 0x165   : > { %v3355_v10 = vpop.eup %3354  ;;  %v1205_v55 = vadd.f32 1.0, %v3353_v47  ;;  %3374 = vpow2.f32 %v2693_v8 }
 0x166   : > { %v3357_v57 = vpop.eup %3356  ;;  %3376 = vrcp.f32 %v1202_v22  ;;  %v1203_v33 = vadd.f32 1.0, %v3355_v10  ;;  %3033 = vmatprep.mubr.bf16.mxu1 %v1430_v15  ;;  %v2975_v42 = vpop.f32.mrb[60].mxu0 }
 0x167   : > { %v3359_v60 = vpop.eup %3358  ;;  %3378 = vrcp.f32 %v1205_v55  ;;  %v1208_v61 = vadd.f32 1.0, %v3357_v57  ;;  %3034 = vmatmul.mubr.bf16.gmra.mrb[40].mxu1 %v1431_v52  ;;  %v4245_v41 = vadd.f32 %v3674_v50, %v2975_v42  ;;  %v947_v2 = vpop.f32.mrb[61].mxu0 }
 0x168   : > { %v3361_v3 = vpop.eup %3360  ;;  %3380 = vrcp.f32 %v1203_v33  ;;  %v1206_v31 = vadd.f32 1.0, %v3359_v60  ;;  %v4248_v6 = vadd.f32 %v3674_v50, %v947_v2  ;;  %v2976_v9 = vpop.f32.mrb[62].mxu0 }
 0x169   : > { %v3363_v36 = vpop.eup %3362  ;;  %3382 = vrcp.f32 %v1208_v61  ;;  %v2699_v35 = vmul.f32 -1.442695, %v4245_v41  ;;  %v950_v37 = vpop.f32.mrb[63].mxu0  ;;  %v1390_v48 = vmul.f32 %v3361_v3, %v4172_v59  ;;  %v4256_v21 = vadd.f32 %v3674_v50, %v2976_v9 }
 0x16a   : > { %v3365_v51 = vpop.eup %3364  ;;  %v1393_v11 = vmul.f32 %v3363_v36, %v4176_v38  ;;  %3384 = vrcp.f32 %v1206_v31  ;;  %v2697_v12 = vmul.f32 -1.442695, %v4248_v6  ;;  %v4258_v24 = vadd.f32 %v3674_v50, %v950_v37 }
 0x16b   : > { %v3367_v18 = vpop.eup %3366  ;;  %v1391_v19 = vmul.f32 %v3365_v51, %v4179_v53  ;;  %3386 = vpow2.f32 %v2696_v1  ;;  %v2700_v59 = vmul.f32 -1.442695, %v4256_v21 }
 0x16c   : > { %v3369_v23 = vpop.eup %3368  ;;  %3388 = vpow2.f32 %v2694_v4  ;;  %v1433_v46 = vpack.c.bf16 %v1393_v11, %v1392_v20  ;;  %v2698_v32 = vmul.f32 -1.442695, %v4258_v24  ;;  %v1396_v44 = vmul.f32 %v3367_v18, %v4185_v14 }
 0x16d   : > { %v3371_v25 = vpop.eup %3370  ;;  %v1209_v43 = vadd.f32 1.0, %v3369_v23  ;;  %3390 = vpow2.f32 %v2699_v35  ;;  %v1432_v38 = vpack.c.bf16 %v1391_v19, %v1390_v48 }
 0x16e   : > { %v3373_v26 = vpop.eup %3372  ;;  %v1207_v16 = vadd.f32 1.0, %v3371_v25  ;;  %3392 = vpow2.f32 %v2697_v12 }
 0x16f   : > { %v3375_v30 = vpop.eup %3374  ;;  %3394 = vrcp.f32 %v1209_v43  ;;  %3037 = vmatprep.mubr.bf16.mxu1 %v1432_v38  ;;  %v1212_v0 = vadd.f32 1.0, %v3373_v26 }
 0x170   : > { %v3377_v53 = vpop.eup %3376  ;;  %3396 = vrcp.f32 %v1207_v16  ;;  %3038 = vmatmul.mubr.bf16.gmra.mrb[44].mxu1 %v1433_v46  ;;  %v1210_v49 = vadd.f32 1.0, %v3375_v30 }
 0x171   : > { %v3379_v34 = vpop.eup %3378  ;;  %v1394_v39 = vmul.f32 %v3377_v53, %v4191_v27  ;;  %3398 = vpow2.f32 %v2700_v59 }
 0x172   : > { %v3381_v56 = vpop.eup %3380  ;;  %v1397_v58 = vmul.f32 %v3379_v34, %v4196_v5  ;;  %3400 = vpow2.f32 %v2698_v32 }
 0x173   : > { %v3383_v29 = vpop.eup %3382  ;;  %v1395_v8 = vmul.f32 %v3381_v56, %v4199_v7  ;;  %3402 = vrcp.f32 %v1212_v0 }
 0x174   : > { %v3385_v52 = vpop.eup %3384  ;;  %v1435_v47 = vpack.c.bf16 %v1397_v58, %v1396_v44  ;;  %3404 = vrcp.f32 %v1210_v49  ;;  %v1400_v57 = vmul.f32 %v3383_v29, %v4205_v40 }
 0x175   : > { %v3387_v22 = vpop.eup %3386  ;;  %v1434_v50 = vpack.c.bf16 %v1395_v8, %v1394_v39  ;;  %v1398_v60 = vmul.f32 %v3385_v52, %v4209_v62 }
 0x176   : > { %v3389_v15 = vpop.eup %3388  ;;  %v1213_v10 = vadd.f32 1.0, %v3387_v22 }
 0x177   : > { %v3391_v55 = vpop.eup %3390  ;;  %v1211_v14 = vadd.f32 1.0, %v3389_v15  ;;  %3041 = vmatprep.mubr.bf16.mxu1 %v1434_v50 }
 0x178   : > { %v3393_v5 = vpop.eup %3392  ;;  %3406 = vrcp.f32 %v1213_v10  ;;  %3042 = vmatmul.mubr.bf16.gmra.mrb[48].mxu1 %v1435_v47  ;;  %v1216_v42 = vadd.f32 1.0, %v3391_v55 }
 0x179   : > { %v3395_v27 = vpop.eup %3394  ;;  %3408 = vrcp.f32 %v1211_v14  ;;  %v1214_v1 = vadd.f32 1.0, %v3393_v5 }
 0x17a   : > { %v3397_v7 = vpop.eup %3396  ;;  %v1401_v33 = vmul.f32 %v3395_v27, %v4217_v17  ;;  %3410 = vrcp.f32 %v1216_v42 }
 0x17b   : > { %v1399_v61 = vmul.f32 %v3397_v7, %v4220_v13  ;;  %v3399_v3 = vpop.eup %3398  ;;  %3412 = vrcp.f32 %v1214_v1 }
 0x17c   : > { %v1437_v2 = vpack.c.bf16 %v1401_v33, %v1400_v57  ;;  %v3401_v4 = vpop.eup %3400  ;;  %v1217_v9 = vadd.f32 1.0, %v3399_v3 }
 0x17d   : > { %v1436_v31 = vpack.c.bf16 %v1399_v61, %v1398_v60  ;;  %v1215_v36 = vadd.f32 1.0, %v3401_v4  ;;  %v3403_v35 = vpop.eup %3402 }
 0x17e   : > { %3414 = vrcp.f32 %v1217_v9  ;;  %v3405_v40 = vpop.eup %3404  ;;  %v1404_v62 = vmul.f32 %v3403_v35, %v4225_v63 }
 0x17f   : > { %3045 = vmatprep.mubr.bf16.mxu1 %v1436_v31  ;;  %3416 = vrcp.f32 %v1215_v36  ;;  %v1402_v51 = vmul.f32 %v3405_v40, %v4228_v28 }
 0x180   : > { %3046 = vmatmul.mubr.bf16.gmra.mrb[52].mxu1 %v1437_v2 }
 0x182   : > { %v3407_v17 = vpop.eup %3406 }
 0x183   : > { %v3409_v37 = vpop.eup %3408  ;;  %v1405_v13 = vmul.f32 %v3407_v17, %v4237_v45 }
 0x184   : > { %v1403_v20 = vmul.f32 %v3409_v37, %v4242_v54  ;;  %v3411_v18 = vpop.eup %3410  ;;  %v4281_v54 = vld [vmem:[%s4839_s5] ss:$0 sm:$0xff] }
 0x185   : > { %v1439_v11 = vpack.c.bf16 %v1405_v13, %v1404_v62  ;;  %v3413_v48 = vpop.eup %3412  ;;  %v1408_v46 = vmul.f32 %v3411_v18, %v4245_v41 }
 0x186   : > { %v1438_v12 = vpack.c.bf16 %v1403_v20, %v1402_v51  ;;  %v1406_v63 = vmul.f32 %v3413_v48, %v4248_v6 }
 0x188   : > { %3049 = vmatprep.mubr.bf16.mxu1 %v1438_v12  ;;  %v3415_v19 = vpop.eup %3414 }
 0x189   : > { %3050 = vmatmul.mubr.bf16.gmra.mrb[56].mxu1 %v1439_v11  ;;  %v3417_v23 = vpop.eup %3416  ;;  %v1409_v25 = vmul.f32 %v3415_v19, %v4256_v21 }
 0x18a   : > { %v1407_v45 = vmul.f32 %v3417_v23, %v4258_v24 }
 0x18b   : > { %v1441_v43 = vpack.c.bf16 %v1409_v25, %v1408_v46 }
 0x18c   : > { %v1440_v28 = vpack.c.bf16 %v1407_v45, %v1406_v63 }
 0x18e   : > { %3053 = vmatprep.mubr.bf16.mxu1 %v1440_v28 }
 0x191   : > { %3054 = vmatmul.mubr.bf16.gmra.mrb[60].mxu1 %v1441_v43 }
 0x1e6   : > { %v2995_v38 = vpop.f32.mrb[0].mxu1 }
 0x1e7   : > { %v4284_v26 = vadd.f32 %v2995_v38, %v4281_v54  ;;  %v1547_v41 = vpop.f32.mrb[1].mxu1 }
 0x1e8   : > { %v4287_v21 = vadd.f32 %v4281_v54, %v1547_v41  ;;  %v2996_v6 = vpop.f32.mrb[2].mxu1  ;;  %v2282_v41 = vlaneseq }
 0x1e9   : > { %v2712_v24 = vmul.f32 -1.442695, %v4284_v26  ;;  %v4291_v16 = vadd.f32 %v2996_v6, %v4281_v54  ;;  %v1550_v30 = vpop.f32.mrb[3].mxu1 }
 0x1ea   : > { %v2710_v59 = vmul.f32 -1.442695, %v4287_v21  ;;  %v4295_v53 = vadd.f32 %v4281_v54, %v1550_v30 }
 0x1eb   : > { %3418 = vpow2.f32 %v2712_v24  ;;  %v2713_v32 = vmul.f32 -1.442695, %v4291_v16 }
 0x1ec   : > { %3420 = vpow2.f32 %v2710_v59  ;;  %v2711_v34 = vmul.f32 -1.442695, %v4295_v53 }
 0x1ed   : > { %3422 = vpow2.f32 %v2713_v32 }
 0x1ee   : > { %3424 = vpow2.f32 %v2711_v34  ;;  %v2999_v56 = vpop.f32.mrb[4].mxu1 }
 0x1ef   : > { %v4300_v44 = vadd.f32 %v2999_v56, %v4281_v54  ;;  %v1563_v58 = vpop.f32.mrb[5].mxu1 }
 0x1f0   : > { %v4303_v0 = vadd.f32 %v4281_v54, %v1563_v58  ;;  %v3000_v29 = vpop.f32.mrb[6].mxu1  ;;  %v4359_v58 = vshrl.u32 %v2282_v41, 7 }
 0x1f1   : > { %v2716_v39 = vmul.f32 -1.442695, %v4300_v44  ;;  %v4307_v8 = vadd.f32 %v3000_v29, %v4281_v54  ;;  %v1566_v49 = vpop.f32.mrb[7].mxu1 }
 0x1f2   : > { %v2714_v52 = vmul.f32 -1.442695, %v4303_v0  ;;  %v4311_v47 = vadd.f32 %v4281_v54, %v1566_v49 }
 0x1f3   : > { %3426 = vpow2.f32 %v2716_v39  ;;  %v2717_v22 = vmul.f32 -1.442695, %v4307_v8 }
 0x1f4   : > { %3428 = vpow2.f32 %v2714_v52  ;;  %v2715_v50 = vmul.f32 -1.442695, %v4311_v47 }
 0x1f5   : > { %v3419_v15 = vpop.eup %3418  ;;  %3430 = vpow2.f32 %v2717_v22 }
 0x1f6   : > { %v3421_v10 = vpop.eup %3420  ;;  %v1996_v55 = vadd.f32 1.0, %v3419_v15  ;;  %3432 = vpow2.f32 %v2715_v50 }
 0x1f7   : > { %v3423_v14 = vpop.eup %3422  ;;  %v1994_v5 = vadd.f32 1.0, %v3421_v10  ;;  %v3003_v27 = vpop.f32.mrb[8].mxu1 }
 0x1f8   : > { %v3425_v7 = vpop.eup %3424  ;;  %3434 = vrcp.f32 %v1996_v55  ;;  %v1997_v57 = vadd.f32 1.0, %v3423_v14  ;;  %v4316_v33 = vadd.f32 %v3003_v27, %v4281_v54  ;;  %v1579_v42 = vpop.f32.mrb[9].mxu1  ;;  %v4370_v55 = vld [vmem:[%s312_s30] sm:$0xf]  ;;  %s3676_s30 = scalar_lea.vmem %s4789_s18, 16 }
 0x1f9   : > { %3436 = vrcp.f32 %v1994_v5  ;;  %v1995_v60 = vadd.f32 1.0, %v3425_v7  ;;  %v4319_v61 = vadd.f32 %v4281_v54, %v1579_v42  ;;  %v3004_v1 = vpop.f32.mrb[10].mxu1  ;;  %p3677_p13 = scmp.ne.s32.totalorder %s4789_s18, %s3676_s30  ;;  %p3684_p3 = scmp.lt.s32.totalorder %s3682_s10, %s3676_s30 }
 0x1fa   : > { %3438 = vrcp.f32 %v1997_v57  ;;  %v2720_v2 = vmul.f32 -1.442695, %v4316_v33  ;;  %v4323_v3 = vadd.f32 %v3004_v1, %v4281_v54  ;;  %v1582_v31 = vpop.f32.mrb[11].mxu1 }
 0x1fb   : > { %3440 = vrcp.f32 %v1995_v60  ;;  %v2718_v4 = vmul.f32 -1.442695, %v4319_v61  ;;  %v4327_v9 = vadd.f32 %v4281_v54, %v1582_v31  ;;  %v2299_v31 = vsub.s32 3, %v4359_v58  ;;  %p3678_p0 = pnand %p3677_p13, %p3840_p4  ;;  %p3685_p5 = por %p3684_p3, %p3683_p2 }
 0x1fc   : > { %3442 = vpow2.f32 %v2720_v2  ;;  %v2721_v36 = vmul.f32 -1.442695, %v4323_v3 }
 0x1fd   : > { %v3427_v35 = vpop.eup %3426  ;;  %3444 = vpow2.f32 %v2718_v4  ;;  %v2719_v40 = vmul.f32 -1.442695, %v4327_v9  ;;  %p3679_p1 = pneg %p3678_p0 }
 0x1fe   : > { %v3429_v17 = vpop.eup %3428  ;;  %v2000_v37 = vadd.f32 1.0, %v3427_v35  ;;  %3446 = vpow2.f32 %v2721_v36 }
 0x1ff   : > { %v3431_v62 = vpop.eup %3430  ;;  %v1998_v13 = vadd.f32 1.0, %v3429_v17  ;;  %3448 = vpow2.f32 %v2719_v40  ;;  %p3686_p6 = pnand %p3685_p5, %p3679_p1 }
 0x200   : > { %v3433_v51 = vpop.eup %3432  ;;  %3450 = vrcp.f32 %v2000_v37  ;;  %v2001_v20 = vadd.f32 1.0, %v3431_v62 }
 0x201   : > { %3452 = vrcp.f32 %v1998_v13  ;;  %v1999_v11 = vadd.f32 1.0, %v3433_v51  ;;  %v3007_v12 = vpop.f32.mrb[12].mxu1 }
 0x202   : > { %v3435_v18 = vpop.eup %3434  ;;  %3454 = vrcp.f32 %v2001_v20  ;;  %v4332_v48 = vadd.f32 %v3007_v12, %v4281_v54  ;;  %v1595_v19 = vpop.f32.mrb[13].mxu1 }
 0x203   : > { %v3437_v23 = vpop.eup %3436  ;;  %3456 = vrcp.f32 %v1999_v11  ;;  %v4335_v46 = vadd.f32 %v4281_v54, %v1595_v19  ;;  %v3008_v25 = vpop.f32.mrb[14].mxu1  ;;  %v4339_v45 = vmul.f32 %v3435_v18, %v4284_v26  ;;  %v3756_v18 = vmov 1.0|1.0  }
 0x204   : > { %v3439_v63 = vpop.eup %3438  ;;  %v2724_v43 = vmul.f32 -1.442695, %v4332_v48  ;;  %v4343_v28 = vadd.f32 %v3008_v25, %v4281_v54  ;;  %v1598_v38 = vpop.f32.mrb[15].mxu1  ;;  %v4346_v24 = vmul.f32 %v3437_v23, %v4287_v21 }
 0x205   : > { %v3441_v6 = vpop.eup %3440  ;;  %v4349_v30 = vmul.f32 %v3439_v63, %v4291_v16  ;;  %v2722_v59 = vmul.f32 -1.442695, %v4335_v46  ;;  %v4353_v26 = vadd.f32 %v4281_v54, %v1598_v38  ;;  %v2295_v63 = vsub.s32 2, %v4359_v58 }
 0x206   : > { %v3443_v32 = vpop.eup %3442  ;;  %v4356_v34 = vmul.f32 %v3441_v6, %v4295_v53  ;;  %3458 = vpow2.f32 %v2724_v43  ;;  %v2725_v56 = vmul.f32 -1.442695, %v4343_v28  ;;  %v2291_v53 = vsub.s32 1, %v4359_v58 }
 0x207   : > { %v3445_v21 = vpop.eup %3444  ;;  %v2251_v16 = vpack.c.bf16 %v4349_v30, %v4339_v45  ;;  %v2004_v29 = vadd.f32 1.0, %v3443_v32  ;;  %3460 = vpow2.f32 %v2722_v59  ;;  %v2723_v15 = vmul.f32 -1.442695, %v4353_v26 }
 0x208   : > { %v3447_v39 = vpop.eup %3446  ;;  %v2250_v49 = vpack.c.bf16 %v4356_v34, %v4346_v24  ;;  %v2002_v52 = vadd.f32 1.0, %v3445_v21  ;;  %3462 = vpow2.f32 %v2725_v56  ;;  %v2292_v57 = vrot.slane %v4370_v55, %v2291_v53 }
 0x209   : > { %v3449_v22 = vpop.eup %3448  ;;  %3464 = vrcp.f32 %v2004_v29  ;;  %v2005_v50 = vadd.f32 1.0, %v3447_v39  ;;  %v3011_v10 = vpop.f32.mrb[16].mxu1  ;;  %v4418_v29 = vrot.slane %v4370_v55, %v2295_v63 }
 0x20a   : > { %v3451_v14 = vpop.eup %3450  ;;  %3466 = vrcp.f32 %v2002_v52  ;;  %v2003_v5 = vadd.f32 1.0, %v3449_v22  ;;  %v4373_v27 = vadd.f32 %v3011_v10, %v4281_v54  ;;  %v1611_v7 = vpop.f32.mrb[17].mxu1  ;;  %vm2302_vm1 = vcmp.eq.s32.totalorder %v4359_v58, %v2292_v57 }
 0x20b   : > { %v3453_v42 = vpop.eup %3452  ;;  %v4377_v60 = vmul.f32 %v3451_v14, %v4300_v44  ;;  %3468 = vrcp.f32 %v2005_v50  ;;  %v4380_v1 = vadd.f32 %v4281_v54, %v1611_v7  ;;  %v3012_v2 = vpop.f32.mrb[18].mxu1  ;;  %vm2778_vm2 = vmpackc.low %vm2302_vm1, %vm2302_vm1  ;;  %vm2303_vm5 = vcmp.eq.s32.totalorder %v4359_v58, %v4418_v29 }
 0x20c   : > { %v3455_v4 = vpop.eup %3454  ;;  %v4384_v36 = vmul.f32 %v3453_v42, %v4303_v0  ;;  %3470 = vrcp.f32 %v2003_v5  ;;  %v2728_v35 = vmul.f32 -1.442695, %v4373_v27  ;;  %v4388_v40 = vadd.f32 %v3012_v2, %v4281_v54  ;;  %v1614_v17 = vpop.f32.mrb[19].mxu1  ;;  %2779 = vmatprep.mubr.msk.bf16.mxu0 %vm2778_vm2, %v3756_v18  ;;  %vm2784_vm8 = vmpackc.low %vm2303_vm5, %vm2303_vm5 }
 0x20d   : > { %v3457_v44 = vpop.eup %3456  ;;  %v4391_v37 = vmul.f32 %v3455_v4, %v4307_v8  ;;  %3472 = vpow2.f32 %v2723_v15  ;;  %v2726_v62 = vmul.f32 -1.442695, %v4380_v1  ;;  %v4395_v13 = vadd.f32 %v4281_v54, %v1614_v17 }
 0x20e   : > { %v4398_v0 = vmul.f32 %v3457_v44, %v4311_v47  ;;  %3474 = vpow2.f32 %v2728_v35  ;;  %v2729_v51 = vmul.f32 -1.442695, %v4388_v40  ;;  %v2300_v47 = vrot.slane %v4370_v55, %v2299_v31 }
 0x20f   : > { %v2253_v20 = vpack.c.bf16 %v4391_v37, %v4377_v60  ;;  %3476 = vpow2.f32 %v2726_v62  ;;  %v2727_v8 = vmul.f32 -1.442695, %v4395_v13 }
 0x210   : > { %v3459_v11 = vpop.eup %3458  ;;  %v2252_v12 = vpack.c.bf16 %v4398_v0, %v4384_v36  ;;  %3478 = vpow2.f32 %v2729_v51  ;;  %vm2304_vm3 = vcmp.eq.s32.totalorder %v4359_v58, %v2300_v47 }
 0x211   : > { %v3461_v19 = vpop.eup %3460  ;;  %v2008_v23 = vadd.f32 1.0, %v3459_v11  ;;  %3480 = vpow2.f32 %v2727_v8  ;;  %v3015_v25 = vpop.f32.mrb[20].mxu1  ;;  %vm2782_vm4 = vmpackc.low %vm2304_vm3, %vm2304_vm3 }
 0x212   : > { %v3463_v43 = vpop.eup %3462  ;;  %v2006_v38 = vadd.f32 1.0, %v3461_v19  ;;  %v4411_v41 = vadd.f32 %v3015_v25, %v4281_v54  ;;  %v1627_v6 = vpop.f32.mrb[21].mxu1  ;;  %2783 = vmatprep.mubr.msk.bf16.mxu1 %vm2782_vm4, %v3756_v18 }
 0x213   : > { %v3465_v59 = vpop.eup %3464  ;;  %3482 = vrcp.f32 %v2008_v23  ;;  %v2009_v32 = vadd.f32 1.0, %v3463_v43  ;;  %v4415_v56 = vadd.f32 %v4281_v54, %v1627_v6  ;;  %v3016_v21 = vpop.f32.mrb[22].mxu1 }
 0x214   : > { %v3467_v39 = vpop.eup %3466  ;;  %3484 = vrcp.f32 %v2006_v38  ;;  %v2732_v52 = vmul.f32 -1.442695, %v4411_v41  ;;  %v4422_v53 = vadd.f32 %v3016_v21, %v4281_v54  ;;  %v1630_v22 = vpop.f32.mrb[23].mxu1  ;;  %v4426_v15 = vmul.f32 %v3465_v59, %v4316_v33 }
 0x215   : > { %v3469_v50 = vpop.eup %3468  ;;  %3486 = vrcp.f32 %v2009_v32  ;;  %v2730_v10 = vmul.f32 -1.442695, %v4415_v56  ;;  %v4430_v14 = vadd.f32 %v4281_v54, %v1630_v22  ;;  %v4439_v33 = vmul.f32 %v3467_v39, %v4319_v61 }
 0x216   : > { %v3471_v5 = vpop.eup %3470  ;;  %v4433_v7 = vmul.f32 %v3469_v50, %v4323_v3  ;;  %3488 = vpow2.f32 %v2732_v52  ;;  %v2733_v57 = vmul.f32 -1.442695, %v4422_v53 }
 0x217   : > { %v3473_v42 = vpop.eup %3472  ;;  %v4442_v2 = vmul.f32 %v3471_v5, %v4327_v9  ;;  %3490 = vpow2.f32 %v2730_v10  ;;  %v2731_v31 = vmul.f32 -1.442695, %v4430_v14 }
 0x218   : > { %v3475_v4 = vpop.eup %3474  ;;  %v2255_v3 = vpack.c.bf16 %v4433_v7, %v4426_v15  ;;  %v2007_v35 = vadd.f32 1.0, %v3473_v42  ;;  %3492 = vpow2.f32 %v2733_v57 }
 0x219   : > { %v3477_v17 = vpop.eup %3476  ;;  %v2254_v44 = vpack.c.bf16 %v4442_v2, %v4439_v33  ;;  %v2012_v62 = vadd.f32 1.0, %v3475_v4  ;;  %3494 = vpow2.f32 %v2731_v31  ;;  %v3019_v61 = vpop.f32.mrb[24].mxu1 }
 0x21a   : > { %v3479_v51 = vpop.eup %3478  ;;  %3496 = vrcp.f32 %v2007_v35  ;;  %v2010_v9 = vadd.f32 1.0, %v3477_v17  ;;  %v4450_v8 = vadd.f32 %v3019_v61, %v4281_v54  ;;  %v1643_v11 = vpop.f32.mrb[25].mxu1 }
 0x21b   : > { %v3481_v47 = vpop.eup %3480  ;;  %3498 = vrcp.f32 %v2012_v62  ;;  %v2013_v19 = vadd.f32 1.0, %v3479_v51  ;;  %v4453_v23 = vadd.f32 %v4281_v54, %v1643_v11  ;;  %v3020_v25 = vpop.f32.mrb[26].mxu1 }
 0x21c   : > { %3500 = vrcp.f32 %v2010_v9  ;;  %v2011_v63 = vadd.f32 1.0, %v3481_v47  ;;  %v2736_v43 = vmul.f32 -1.442695, %v4450_v8  ;;  %v4457_v38 = vadd.f32 %v3020_v25, %v4281_v54  ;;  %v1646_v6 = vpop.f32.mrb[27].mxu1 }
 0x21d   : > { %v3483_v59 = vpop.eup %3482  ;;  %3502 = vrcp.f32 %v2013_v19  ;;  %v2734_v32 = vmul.f32 -1.442695, %v4453_v23  ;;  %v4461_v21 = vadd.f32 %v4281_v54, %v1646_v6 }
 0x21e   : > { %v3485_v39 = vpop.eup %3484  ;;  %3504 = vrcp.f32 %v2011_v63  ;;  %v2737_v52 = vmul.f32 -1.442695, %v4457_v38  ;;  %v4466_v5 = vmul.f32 %v3483_v59, %v4332_v48 }
 0x21f   : > { %v3487_v22 = vpop.eup %3486  ;;  %3506 = vpow2.f32 %v2736_v43  ;;  %v2735_v50 = vmul.f32 -1.442695, %v4461_v21  ;;  %v4477_v9 = vmul.f32 %v3485_v39, %v4335_v46 }
 0x220   : > { %v3489_v10 = vpop.eup %3488  ;;  %v4469_v57 = vmul.f32 %v3487_v22, %v4343_v28  ;;  %3508 = vpow2.f32 %v2734_v32 }
 0x221   : > { %v3491_v42 = vpop.eup %3490  ;;  %v2016_v31 = vadd.f32 1.0, %v3489_v10  ;;  %3510 = vpow2.f32 %v2737_v52  ;;  %v3023_v4 = vpop.f32.mrb[28].mxu1 }
 0x222   : > { %v3493_v35 = vpop.eup %3492  ;;  %v2257_v17 = vpack.c.bf16 %v4469_v57, %v4466_v5  ;;  %v2014_v62 = vadd.f32 1.0, %v3491_v42  ;;  %3512 = vpow2.f32 %v2735_v50  ;;  %v4474_v61 = vadd.f32 %v3023_v4, %v4281_v54  ;;  %v1659_v51 = vpop.f32.mrb[29].mxu1 }
 0x223   : > { %v3495_v48 = vpop.eup %3494  ;;  %3514 = vrcp.f32 %v2016_v31  ;;  %v2017_v28 = vadd.f32 1.0, %v3493_v35  ;;  %v4480_v11 = vadd.f32 %v4281_v54, %v1659_v51  ;;  %v3024_v47 = vpop.f32.mrb[30].mxu1 }
 0x224   : > { %v3497_v19 = vpop.eup %3496  ;;  %3516 = vrcp.f32 %v2014_v62  ;;  %v2015_v25 = vadd.f32 1.0, %v3495_v48  ;;  %v2740_v63 = vmul.f32 -1.442695, %v4474_v61  ;;  %v4484_v43 = vadd.f32 %v3024_v47, %v4281_v54  ;;  %v1662_v6 = vpop.f32.mrb[31].mxu1 }
 0x225   : > { %v3499_v59 = vpop.eup %3498  ;;  %v4487_v32 = vmul.f32 %v3497_v19, %v4353_v26  ;;  %3518 = vrcp.f32 %v2017_v28  ;;  %v2738_v46 = vmul.f32 -1.442695, %v4480_v11  ;;  %v4491_v39 = vadd.f32 %v4281_v54, %v1662_v6 }
 0x226   : > { %v3501_v52 = vpop.eup %3500  ;;  %3520 = vrcp.f32 %v2015_v25  ;;  %v2741_v22 = vmul.f32 -1.442695, %v4484_v43  ;;  %v2204_v26 = vmul.f32 %v3499_v59, %v4373_v27 }
 0x227   : > { %v3503_v50 = vpop.eup %3502  ;;  %v2256_v10 = vpack.c.bf16 %v4487_v32, %v4477_v9  ;;  %3522 = vpow2.f32 %v2740_v63  ;;  %v2739_v42 = vmul.f32 -1.442695, %v4491_v39  ;;  %v2202_v62 = vmul.f32 %v3501_v52, %v4380_v1 }
 0x228   : > { %v3505_v31 = vpop.eup %3504  ;;  %v2205_v4 = vmul.f32 %v3503_v50, %v4388_v40  ;;  %3524 = vpow2.f32 %v2738_v46 }
 0x229   : > { %v3507_v35 = vpop.eup %3506  ;;  %v2203_v51 = vmul.f32 %v3505_v31, %v4395_v13  ;;  %3526 = vpow2.f32 %v2741_v22 }
 0x22a   : > { %v3509_v48 = vpop.eup %3508  ;;  %v2020_v28 = vadd.f32 1.0, %v3507_v35  ;;  %3528 = vpow2.f32 %v2739_v42  ;;  %v3027_v47 = vpop.f32.mrb[32].mxu1  ;;  %v2259_v19 = vpack.c.bf16 %v2205_v4, %v2204_v26 }
 0x22b   : > { %v3511_v25 = vpop.eup %3510  ;;  %v2018_v63 = vadd.f32 1.0, %v3509_v48  ;;  %v4502_v6 = vadd.f32 %v3027_v47, %v4281_v54  ;;  %v1675_v27 = vpop.f32.mrb[33].mxu1  ;;  %v2258_v59 = vpack.c.bf16 %v2203_v51, %v2202_v62 }
 0x22c   : > { %v3513_v40 = vpop.eup %3512  ;;  %3530 = vrcp.f32 %v2020_v28  ;;  %v2021_v46 = vadd.f32 1.0, %v3511_v25  ;;  %v4505_v1 = vadd.f32 %v4281_v54, %v1675_v27  ;;  %v3028_v13 = vpop.f32.mrb[34].mxu1 }
 0x22d   : > { %v3515_v52 = vpop.eup %3514  ;;  %3532 = vrcp.f32 %v2018_v63  ;;  %v2019_v22 = vadd.f32 1.0, %v3513_v40  ;;  %v2744_v50 = vmul.f32 -1.442695, %v4502_v6  ;;  %v4509_v42 = vadd.f32 %v3028_v13, %v4281_v54  ;;  %v1678_v31 = vpop.f32.mrb[35].mxu1  ;;  %2863 = vmatprep.subr.bf16.mxu0 %v2258_v59 }
 0x22e   : > { %v3517_v26 = vpop.eup %3516  ;;  %3534 = vrcp.f32 %v2021_v46  ;;  %v2742_v4 = vmul.f32 -1.442695, %v4505_v1  ;;  %v4513_v35 = vadd.f32 %v4281_v54, %v1678_v31  ;;  %2864 = vmatpush3.bf16.msra.mxu0 %v2250_v49  ;;  %v2208_v28 = vmul.f32 %v3515_v52, %v4411_v41 }
 0x22f   : > { %v3519_v62 = vpop.eup %3518  ;;  %3536 = vrcp.f32 %v2019_v22  ;;  %v2745_v51 = vmul.f32 -1.442695, %v4509_v42  ;;  %2865 = vmatprep.subr.bf16.mxu0 %v2259_v19  ;;  %v2206_v27 = vmul.f32 %v3517_v26, %v4415_v56 }
 0x230   : > { %v3521_v48 = vpop.eup %3520  ;;  %v2209_v47 = vmul.f32 %v3519_v62, %v4422_v53  ;;  %3538 = vpow2.f32 %v2744_v50  ;;  %v2743_v25 = vmul.f32 -1.442695, %v4513_v35 }
 0x231   : > { %v3523_v63 = vpop.eup %3522  ;;  %v2207_v59 = vmul.f32 %v3521_v48, %v4430_v14  ;;  %3540 = vpow2.f32 %v2742_v4 }
 0x232   : > { %v3525_v24 = vpop.eup %3524  ;;  %v2024_v34 = vadd.f32 1.0, %v3523_v63  ;;  %3542 = vpow2.f32 %v2745_v51  ;;  %v3031_v49 = vpop.f32.mrb[36].mxu1  ;;  %2866 = vmatpush3.bf16.msra.mxu0 %v2251_v16  ;;  %v2261_v41 = vpack.c.bf16 %v2209_v47, %v2208_v28 }
 0x233   : > { %v3527_v19 = vpop.eup %3526  ;;  %v2022_v53 = vadd.f32 1.0, %v3525_v24  ;;  %3544 = vpow2.f32 %v2743_v25  ;;  %v4528_v40 = vadd.f32 %v3031_v49, %v4281_v54  ;;  %v1691_v46 = vpop.f32.mrb[37].mxu1  ;;  %v2260_v56 = vpack.c.bf16 %v2207_v59, %v2206_v27 }
 0x234   : > { %v3529_v13 = vpop.eup %3528  ;;  %3546 = vrcp.f32 %v2024_v34  ;;  %v2025_v14 = vadd.f32 1.0, %v3527_v19  ;;  %v4531_v52 = vadd.f32 %v4281_v54, %v1691_v46  ;;  %v3032_v22 = vpop.f32.mrb[38].mxu1 }
 0x235   : > { %3548 = vrcp.f32 %v2022_v53  ;;  %v2023_v50 = vadd.f32 1.0, %v3529_v13  ;;  %v2748_v45 = vmul.f32 -1.442695, %v4528_v40  ;;  %v4535_v30 = vadd.f32 %v3032_v22, %v4281_v54  ;;  %v1694_v16 = vpop.f32.mrb[39].mxu1  ;;  %2867 = vmatprep.subr.bf16.mxu0 %v2260_v56 }
 0x236   : > { %v3531_v31 = vpop.eup %3530  ;;  %3550 = vrcp.f32 %v2025_v14  ;;  %v2746_v26 = vmul.f32 -1.442695, %v4531_v52  ;;  %v4539_v4 = vadd.f32 %v4281_v54, %v1694_v16  ;;  %2868 = vmatpush3.bf16.msra.mxu0 %v2252_v12  ;;  %v2287_v16 = vsub.s32 0, %v4359_v58 }
 0x237   : > { %v3533_v62 = vpop.eup %3532  ;;  %3552 = vrcp.f32 %v2023_v50  ;;  %v2749_v51 = vmul.f32 -1.442695, %v4535_v30  ;;  %2869 = vmatprep.subr.bf16.mxu0 %v2261_v41  ;;  %v2212_v25 = vmul.f32 %v3531_v31, %v4450_v8 }
 0x238   : > { %v3535_v48 = vpop.eup %3534  ;;  %3554 = vpow2.f32 %v2748_v45  ;;  %v2747_v28 = vmul.f32 -1.442695, %v4539_v4  ;;  %v2210_v59 = vmul.f32 %v3533_v62, %v4453_v23 }
 0x239   : > { %v3537_v47 = vpop.eup %3536  ;;  %v2213_v63 = vmul.f32 %v3535_v48, %v4457_v38  ;;  %3556 = vpow2.f32 %v2746_v26 }
 0x23a   : > { %v3539_v27 = vpop.eup %3538  ;;  %v2211_v36 = vmul.f32 %v3537_v47, %v4461_v21  ;;  %3558 = vpow2.f32 %v2749_v51  ;;  %v3035_v0 = vpop.f32.mrb[40].mxu1  ;;  %2870 = vmatpush3.bf16.msra.mxu0 %v2253_v20 }
 0x23b   : > { %v3541_v12 = vpop.eup %3540  ;;  %v2028_v24 = vadd.f32 1.0, %v3539_v27  ;;  %3560 = vpow2.f32 %v2747_v28  ;;  %v4554_v34 = vadd.f32 %v3035_v0, %v4281_v54  ;;  %v1707_v8 = vpop.f32.mrb[41].mxu1  ;;  %v2263_v38 = vpack.c.bf16 %v2213_v63, %v2212_v25 }
 0x23c   : > { %v3543_v49 = vpop.eup %3542  ;;  %v2026_v41 = vadd.f32 1.0, %v3541_v12  ;;  %v4557_v23 = vadd.f32 %v4281_v54, %v1707_v8  ;;  %v3036_v21 = vpop.f32.mrb[42].mxu1  ;;  %v2262_v19 = vpack.c.bf16 %v2211_v36, %v2210_v59 }
 0x23d   : > { %v3545_v53 = vpop.eup %3544  ;;  %3562 = vrcp.f32 %v2028_v24  ;;  %v2029_v46 = vadd.f32 1.0, %v3543_v49  ;;  %v2752_v60 = vmul.f32 -1.442695, %v4554_v34  ;;  %v4561_v37 = vadd.f32 %v3036_v21, %v4281_v54  ;;  %v1710_v20 = vpop.f32.mrb[43].mxu1 }
 0x23e   : > { %v3547_v56 = vpop.eup %3546  ;;  %3564 = vrcp.f32 %v2026_v41  ;;  %v2027_v13 = vadd.f32 1.0, %v3545_v53  ;;  %v2750_v14 = vmul.f32 -1.442695, %v4557_v23  ;;  %v4565_v22 = vadd.f32 %v4281_v54, %v1710_v20  ;;  %2871 = vmatprep.subr.bf16.mxu0 %v2262_v19 }
 0x23f   : > { %v3549_v50 = vpop.eup %3548  ;;  %3566 = vrcp.f32 %v2029_v46  ;;  %v2753_v45 = vmul.f32 -1.442695, %v4561_v37  ;;  %2872 = vmatpush3.bf16.msra.mxu0 %v2254_v44  ;;  %v2216_v51 = vmul.f32 %v3547_v56, %v4474_v61  ;;  %v2288_v61 = vrot.slane %v4370_v55, %v2287_v16 }
 0x240   : > { %v3551_v31 = vpop.eup %3550  ;;  %3568 = vrcp.f32 %v2027_v13  ;;  %v2751_v26 = vmul.f32 -1.442695, %v4565_v22  ;;  %2873 = vmatprep.subr.bf16.mxu0 %v2263_v38  ;;  %v2214_v47 = vmul.f32 %v3549_v50, %v4480_v11 }
 0x241   : > { %v3553_v62 = vpop.eup %3552  ;;  %v2217_v48 = vmul.f32 %v3551_v31, %v4484_v43  ;;  %3570 = vpow2.f32 %v2752_v60  ;;  %vm2301_vm6 = vcmp.eq.s32.totalorder %v4359_v58, %v2288_v61 }
 0x242   : > { %v3555_v28 = vpop.eup %3554  ;;  %v2215_v25 = vmul.f32 %v3553_v62, %v4491_v39  ;;  %3572 = vpow2.f32 %v2750_v14  ;;  %vm4616_vm7 = vmpackc.low %vm2301_vm6, %vm2301_vm6 }
 0x243   : > { %v3557_v33 = vpop.eup %3556  ;;  %v2032_v2 = vadd.f32 1.0, %v3555_v28  ;;  %3574 = vpow2.f32 %v2753_v45  ;;  %v3039_v44 = vpop.f32.mrb[44].mxu1  ;;  %2874 = vmatpush3.bf16.msra.mxu0 %v2255_v3  ;;  %v2265_v63 = vpack.c.bf16 %v2217_v48, %v2216_v51 }
 0x244   : > { %v3559_v27 = vpop.eup %3558  ;;  %v2030_v43 = vadd.f32 1.0, %v3557_v33  ;;  %3576 = vpow2.f32 %v2751_v26  ;;  %v4582_v59 = vadd.f32 %v3039_v44, %v4281_v54  ;;  %v1723_v11 = vpop.f32.mrb[45].mxu1  ;;  %v2264_v39 = vpack.c.bf16 %v2215_v25, %v2214_v47 }
 0x245   : > { %v3561_v36 = vpop.eup %3560  ;;  %3578 = vrcp.f32 %v2032_v2  ;;  %v2033_v0 = vadd.f32 1.0, %v3559_v27  ;;  %v4585_v12 = vadd.f32 %v4281_v54, %v1723_v11  ;;  %v3040_v24 = vpop.f32.mrb[46].mxu1 }
 0x246   : > { %3580 = vrcp.f32 %v2030_v43  ;;  %v2031_v15 = vadd.f32 1.0, %v3561_v36  ;;  %v2756_v7 = vmul.f32 -1.442695, %v4582_v59  ;;  %v4589_v55 = vadd.f32 %v3040_v24, %v4281_v54  ;;  %v1726_v3 = vpop.f32.mrb[47].mxu1  ;;  %2875 = vmatprep.subr.bf16.mxu0 %v2264_v39 }
 0x247   : > { %v3563_v8 = vpop.eup %3562  ;;  %3582 = vrcp.f32 %v2033_v0  ;;  %v2754_v38 = vmul.f32 -1.442695, %v4585_v12  ;;  %v4593_v49 = vadd.f32 %v4281_v54, %v1726_v3  ;;  %2876 = vmatpush3.bf16.msra.mxu0 %v2256_v10 }
 0x248   : > { %v3565_v41 = vpop.eup %3564  ;;  %3584 = vrcp.f32 %v2031_v15  ;;  %v2757_v21 = vmul.f32 -1.442695, %v4589_v55  ;;  %2877 = vmatprep.subr.bf16.mxu0 %v2265_v63  ;;  %v4602_v60 = vmul.f32 %v3563_v8, %v4502_v6 }
 0x249   : > { %v3567_v19 = vpop.eup %3566  ;;  %3586 = vpow2.f32 %v2756_v7  ;;  %v2755_v53 = vmul.f32 -1.442695, %v4593_v49  ;;  %v4608_v32 = vmul.f32 %v3565_v41, %v4505_v1 }
 0x24a   : > { %v3569_v46 = vpop.eup %3568  ;;  %v4605_v20 = vmul.f32 %v3567_v19, %v4509_v42  ;;  %3588 = vpow2.f32 %v2754_v38 }
 0x24b   : > { %v3571_v9 = vpop.eup %3570  ;;  %v4611_v10 = vmul.f32 %v3569_v46, %v4513_v35  ;;  %3590 = vpow2.f32 %v2757_v21  ;;  %v3043_v56 = vpop.f32.mrb[48].mxu1  ;;  %2878 = vmatpush3.bf16.msra.mxu0 %v2257_v17 }
 0x24c   : > { %v3573_v42 = vpop.eup %3572  ;;  %v2267_v13 = vpack.c.bf16 %v4605_v20, %v4602_v60  ;;  %v2036_v14 = vadd.f32 1.0, %v3571_v9  ;;  %3592 = vpow2.f32 %v2755_v53  ;;  %v4623_v1 = vadd.f32 %v3043_v56, %v4281_v54  ;;  %v1739_v35 = vpop.f32.mrb[49].mxu1 }
 0x24d   : > { %v3575_v50 = vpop.eup %3574  ;;  %v2266_v45 = vpack.c.bf16 %v4611_v10, %v4608_v32  ;;  %v2034_v5 = vadd.f32 1.0, %v3573_v42  ;;  %v4628_v57 = vadd.f32 %v4281_v54, %v1739_v35  ;;  %v3044_v17 = vpop.f32.mrb[50].mxu1 }
 0x24e   : > { %v3577_v16 = vpop.eup %3576  ;;  %3594 = vrcp.f32 %v2036_v14  ;;  %v2037_v31 = vadd.f32 1.0, %v3575_v50  ;;  %v2760_v26 = vmul.f32 -1.442695, %v4623_v1  ;;  %v4632_v62 = vadd.f32 %v3044_v17, %v4281_v54  ;;  %v1742_v51 = vpop.f32.mrb[51].mxu1  ;;  %2781 = vmatmul.mubr.msk.bf16.vlgmr.msra.gmra.mrb[64].mxu0 %vm4616_vm7, %v3756_v18 }
 0x24f   : > { %v3579_v48 = vpop.eup %3578  ;;  %3596 = vrcp.f32 %v2034_v5  ;;  %v2035_v28 = vadd.f32 1.0, %v3577_v16  ;;  %v2758_v47 = vmul.f32 -1.442695, %v4628_v57  ;;  %v4639_v25 = vadd.f32 %v4281_v54, %v1742_v51 }
 0x250   : > { %v3581_v33 = vpop.eup %3580  ;;  %3598 = vrcp.f32 %v2037_v31  ;;  %v2761_v2 = vmul.f32 -1.442695, %v4632_v62  ;;  %v4644_v27 = vmul.f32 %v3579_v48, %v4528_v40 }
 0x251   : > { %v3583_v44 = vpop.eup %3582  ;;  %3600 = vrcp.f32 %v2035_v28  ;;  %v2759_v63 = vmul.f32 -1.442695, %v4639_v25  ;;  %v4650_v39 = vmul.f32 %v3581_v33, %v4531_v52 }
 0x252   : > { %v3585_v61 = vpop.eup %3584  ;;  %v4647_v43 = vmul.f32 %v3583_v44, %v4535_v30  ;;  %3602 = vpow2.f32 %v2760_v26 }
 0x253   : > { %v3587_v11 = vpop.eup %3586  ;;  %v4653_v36 = vmul.f32 %v3585_v61, %v4539_v4  ;;  %3604 = vpow2.f32 %v2758_v47  ;;  %v3047_v0 = vpop.f32.mrb[52].mxu1 }
 0x254   : > { %v3589_v24 = vpop.eup %3588  ;;  %v2269_v15 = vpack.c.bf16 %v4647_v43, %v4644_v27  ;;  %v2040_v7 = vadd.f32 1.0, %v3587_v11  ;;  %3606 = vpow2.f32 %v2761_v2  ;;  %v4658_v40 = vadd.f32 %v3047_v0, %v4281_v54  ;;  %v1755_v30 = vpop.f32.mrb[53].mxu1 }
 0x255   : > { %v3591_v3 = vpop.eup %3590  ;;  %v2268_v52 = vpack.c.bf16 %v4653_v36, %v4650_v39  ;;  %v2038_v8 = vadd.f32 1.0, %v3589_v24  ;;  %3608 = vpow2.f32 %v2759_v63  ;;  %v4663_v4 = vadd.f32 %v4281_v54, %v1755_v30  ;;  %v3048_v38 = vpop.f32.mrb[54].mxu1 }
 0x256   : > { %v3593_v41 = vpop.eup %3592  ;;  %3610 = vrcp.f32 %v2040_v7  ;;  %v2041_v21 = vadd.f32 1.0, %v3591_v3  ;;  %v2764_v19 = vmul.f32 -1.442695, %v4658_v40  ;;  %v4667_v53 = vadd.f32 %v3048_v38, %v4281_v54  ;;  %v1758_v46 = vpop.f32.mrb[55].mxu1 }
 0x257   : > { %3612 = vrcp.f32 %v2038_v8  ;;  %v2039_v9 = vadd.f32 1.0, %v3593_v41  ;;  %v2762_v56 = vmul.f32 -1.442695, %v4663_v4  ;;  %v4671_v6 = vadd.f32 %v4281_v54, %v1758_v46 }
 0x258   : > { %v3595_v42 = vpop.eup %3594  ;;  %3614 = vrcp.f32 %v2041_v21  ;;  %v2765_v14 = vmul.f32 -1.442695, %v4667_v53 }
 0x259   : > { %v3597_v35 = vpop.eup %3596  ;;  %3616 = vrcp.f32 %v2039_v9  ;;  %v2763_v50 = vmul.f32 -1.442695, %v4671_v6  ;;  %v4676_v16 = vmul.f32 %v3595_v42, %v4554_v34  ;;  %v3675_v34 = vld [vmem:[%s4839_s5] ss:$0 sm:$0xff] }
 0x25a   : > { %v3599_v5 = vpop.eup %3598  ;;  %3618 = vpow2.f32 %v2764_v19  ;;  %v4682_v26 = vmul.f32 %v3597_v35, %v4557_v23 }
 0x25b   : > { %v3601_v17 = vpop.eup %3600  ;;  %v4679_v31 = vmul.f32 %v3599_v5, %v4561_v37  ;;  %3620 = vpow2.f32 %v2762_v56 }
 0x25c   : > { %v3603_v54 = vpop.eup %3602  ;;  %v4685_v51 = vmul.f32 %v3601_v17, %v4565_v22  ;;  %3622 = vpow2.f32 %v2765_v14  ;;  %v3051_v48 = vpop.f32.mrb[56].mxu1 }
 0x25d   : > { %v3605_v28 = vpop.eup %3604  ;;  %v2271_v47 = vpack.c.bf16 %v4679_v31, %v4676_v16  ;;  %v2044_v33 = vadd.f32 1.0, %v3603_v54  ;;  %3624 = vpow2.f32 %v2763_v50  ;;  %v4692_v37 = vadd.f32 %v3675_v34, %v3051_v48  ;;  %v1771_v2 = vpop.f32.mrb[57].mxu1 }
 0x25e   : > { %v3607_v23 = vpop.eup %3606  ;;  %v2270_v22 = vpack.c.bf16 %v4685_v51, %v4682_v26  ;;  %v2042_v44 = vadd.f32 1.0, %v3605_v28  ;;  %v4696_v63 = vadd.f32 %v3675_v34, %v1771_v2  ;;  %v3052_v61 = vpop.f32.mrb[58].mxu1  ;;  %v3757_v16 = vmov 0.0  }
 0x25f   : > { %v3609_v11 = vpop.eup %3608  ;;  %3626 = vrcp.f32 %v2044_v33  ;;  %v2045_v0 = vadd.f32 1.0, %v3607_v23  ;;  %v2768_v24 = vmul.f32 -1.442695, %v4692_v37  ;;  %v4699_v7 = vadd.f32 %v3675_v34, %v3052_v61  ;;  %v1774_v30 = vpop.f32.mrb[59].mxu1  ;;  %3057 = vmatprep.subr.mxu0 %v3757_v16  ;;  %3059 = vmatprep.mubr.msk.f32.mxu0 %vm3758_vm9, %v3757_v16 }
 0x260   : > { %v3611_v3 = vpop.eup %3610  ;;  %3628 = vrcp.f32 %v2042_v44  ;;  %v2043_v8 = vadd.f32 1.0, %v3609_v11  ;;  %v2766_v38 = vmul.f32 -1.442695, %v4696_v63  ;;  %v4702_v41 = vadd.f32 %v3675_v34, %v1774_v30 }
 0x261   : > { %v3613_v21 = vpop.eup %3612  ;;  %3630 = vrcp.f32 %v2045_v0  ;;  %v2769_v19 = vmul.f32 -1.442695, %v4699_v7  ;;  %v4707_v42 = vmul.f32 %v3611_v3, %v4582_v59 }
 0x262   : > { %v3615_v46 = vpop.eup %3614  ;;  %3632 = vrcp.f32 %v2043_v8  ;;  %v2767_v9 = vmul.f32 -1.442695, %v4702_v41  ;;  %v4713_v50 = vmul.f32 %v3613_v21, %v4585_v12 }
 0x263   : > { %v3617_v56 = vpop.eup %3616  ;;  %v4710_v14 = vmul.f32 %v3615_v46, %v4589_v55  ;;  %3634 = vpow2.f32 %v2768_v24 }
 0x264   : > { %v3619_v35 = vpop.eup %3618  ;;  %v4716_v5 = vmul.f32 %v3617_v56, %v4593_v49  ;;  %3636 = vpow2.f32 %v2766_v38  ;;  %v3055_v17 = vpop.f32.mrb[60].mxu1 }
 0x265   : > { %v3621_v54 = vpop.eup %3620  ;;  %v2273_v48 = vpack.c.bf16 %v4710_v14, %v4707_v42  ;;  %v2048_v28 = vadd.f32 1.0, %v3619_v35  ;;  %3638 = vpow2.f32 %v2769_v19  ;;  %v4720_v59 = vadd.f32 %v3675_v34, %v3055_v17  ;;  %v1787_v55 = vpop.f32.mrb[61].mxu1 }
 0x266   : > { %v3623_v33 = vpop.eup %3622  ;;  %v2272_v2 = vpack.c.bf16 %v4716_v5, %v4713_v50  ;;  %v2046_v12 = vadd.f32 1.0, %v3621_v54  ;;  %3640 = vpow2.f32 %v2767_v9  ;;  %v4724_v23 = vadd.f32 %v3675_v34, %v1787_v55  ;;  %v3056_v49 = vpop.f32.mrb[62].mxu1 }
 0x267   : > { %v3625_v44 = vpop.eup %3624  ;;  %3642 = vrcp.f32 %v2048_v28  ;;  %v2049_v61 = vadd.f32 1.0, %v3623_v33  ;;  %v2772_v11 = vmul.f32 -1.442695, %v4720_v59  ;;  %v4727_v0 = vadd.f32 %v3675_v34, %v3056_v49  ;;  %v1790_v24 = vpop.f32.mrb[63].mxu1 }
 0x268   : > { %3644 = vrcp.f32 %v2046_v12  ;;  %v2047_v30 = vadd.f32 1.0, %v3625_v44  ;;  %v2770_v3 = vmul.f32 -1.442695, %v4724_v23  ;;  %v4730_v8 = vadd.f32 %v3675_v34, %v1790_v24 }
 0x269   : > { %v3627_v38 = vpop.eup %3626  ;;  %3646 = vrcp.f32 %v2049_v61  ;;  %v2773_v21 = vmul.f32 -1.442695, %v4727_v0 }
 0x26a   : > { %v3629_v19 = vpop.eup %3628  ;;  %3648 = vrcp.f32 %v2047_v30  ;;  %v2771_v46 = vmul.f32 -1.442695, %v4730_v8  ;;  %v2236_v35 = vmul.f32 %v3627_v38, %v4623_v1 }
 0x26b   : > { %v3631_v9 = vpop.eup %3630  ;;  %3650 = vpow2.f32 %v2772_v11  ;;  %v2234_v34 = vmul.f32 %v3629_v19, %v4628_v57 }
 0x26c   : > { %v3633_v56 = vpop.eup %3632  ;;  %v2237_v17 = vmul.f32 %v3631_v9, %v4632_v62  ;;  %3652 = vpow2.f32 %v2770_v3 }
 0x26d   : > { %v3635_v54 = vpop.eup %3634  ;;  %v2235_v28 = vmul.f32 %v3633_v56, %v4639_v25  ;;  %3654 = vpow2.f32 %v2773_v21 }
 0x26e   : > { %v3637_v55 = vpop.eup %3636  ;;  %v2052_v33 = vadd.f32 1.0, %v3635_v54  ;;  %3656 = vpow2.f32 %v2771_v46  ;;  %v2275_v12 = vpack.c.bf16 %v2237_v17, %v2236_v35 }
 0x26f   : > { %v3639_v49 = vpop.eup %3638  ;;  %v2050_v44 = vadd.f32 1.0, %v3637_v55  ;;  %v2274_v61 = vpack.c.bf16 %v2235_v28, %v2234_v34 }
 0x270   : > { %v3641_v11 = vpop.eup %3640  ;;  %3658 = vrcp.f32 %v2052_v33  ;;  %v2053_v24 = vadd.f32 1.0, %v3639_v49 }
 0x271   : > { %v3643_v1 = vpop.eup %3642  ;;  %3660 = vrcp.f32 %v2050_v44  ;;  %v2051_v62 = vadd.f32 1.0, %v3641_v11  ;;  %2885 = vmatprep.subr.bf16.mxu1 %v2274_v61 }
 0x272   : > { %v3645_v30 = vpop.eup %3644  ;;  %3662 = vrcp.f32 %v2053_v24  ;;  %2886 = vmatpush3.bf16.msra.mxu1 %v2266_v45  ;;  %v2240_v3 = vmul.f32 %v3643_v1, %v4658_v40 }
 0x273   : > { %v3647_v57 = vpop.eup %3646  ;;  %3664 = vrcp.f32 %v2051_v62  ;;  %2887 = vmatprep.subr.bf16.mxu1 %v2275_v12  ;;  %v2238_v19 = vmul.f32 %v3645_v30, %v4663_v4 }
 0x274   : > { %v3649_v25 = vpop.eup %3648  ;;  %v2241_v38 = vmul.f32 %v3647_v57, %v4667_v53 }
 0x275   : > { %v3651_v21 = vpop.eup %3650  ;;  %v2239_v46 = vmul.f32 %v3649_v25, %v4671_v6 }
 0x276   : > { %v3653_v9 = vpop.eup %3652  ;;  %v2056_v56 = vadd.f32 1.0, %v3651_v21  ;;  %2888 = vmatpush3.bf16.msra.mxu1 %v2267_v13  ;;  %v2277_v32 = vpack.c.bf16 %v2241_v38, %v2240_v3 }
 0x277   : > { %v3655_v10 = vpop.eup %3654  ;;  %v2054_v45 = vadd.f32 1.0, %v3653_v9  ;;  %v2276_v35 = vpack.c.bf16 %v2239_v46, %v2238_v19 }
 0x278   : > { %v3657_v17 = vpop.eup %3656  ;;  %3666 = vrcp.f32 %v2056_v56  ;;  %v2057_v40 = vadd.f32 1.0, %v3655_v10 }
 0x279   : > { %3668 = vrcp.f32 %v2054_v45  ;;  %v2055_v53 = vadd.f32 1.0, %v3657_v17  ;;  %2889 = vmatprep.subr.bf16.mxu1 %v2276_v35 }
 0x27a   : > { %v3659_v54 = vpop.eup %3658  ;;  %3670 = vrcp.f32 %v2057_v40  ;;  %2890 = vmatpush3.bf16.msra.mxu1 %v2268_v52 }
 0x27b   : > { %v3661_v4 = vpop.eup %3660  ;;  %3672 = vrcp.f32 %v2055_v53  ;;  %2891 = vmatprep.subr.bf16.mxu1 %v2277_v32  ;;  %v2244_v13 = vmul.f32 %v3659_v54, %v4692_v37 }
 0x27c   : > { %v3663_v60 = vpop.eup %3662  ;;  %v2242_v34 = vmul.f32 %v3661_v4, %v4696_v63 }
 0x27d   : > { %v3665_v20 = vpop.eup %3664  ;;  %v2245_v6 = vmul.f32 %v3663_v60, %v4699_v7 }
 0x27e   : > { %v2243_v28 = vmul.f32 %v3665_v20, %v4702_v41  ;;  %2892 = vmatpush3.bf16.msra.mxu1 %v2269_v15 }
 0x27f   : > { %v2279_v55 = vpack.c.bf16 %v2245_v6, %v2244_v13 }
 0x280   : > { %v2278_v39 = vpack.c.bf16 %v2243_v28, %v2242_v34 }
 0x282   : > { %v3667_v36 = vpop.eup %3666  ;;  %2893 = vmatprep.subr.bf16.mxu1 %v2278_v39 }
 0x283   : > { %v3669_v52 = vpop.eup %3668  ;;  %2894 = vmatpush3.bf16.msra.mxu1 %v2270_v22  ;;  %v2248_v63 = vmul.f32 %v3667_v36, %v4720_v59 }
 0x284   : > { %v3671_v37 = vpop.eup %3670  ;;  %2895 = vmatprep.subr.bf16.mxu1 %v2279_v55  ;;  %v2246_v33 = vmul.f32 %v3669_v52, %v4724_v23 }
 0x285   : > { %v3673_v7 = vpop.eup %3672  ;;  %v2249_v41 = vmul.f32 %v3671_v37, %v4727_v0 }
 0x286   : > { %v2247_v27 = vmul.f32 %v3673_v7, %v4730_v8 }
 0x287   : > { %2896 = vmatpush3.bf16.msra.mxu1 %v2271_v47  ;;  %v2281_v43 = vpack.c.bf16 %v2249_v41, %v2248_v63 }
 0x288   : > { %v2280_v15 = vpack.c.bf16 %v2247_v27, %v2246_v33 }
 0x28a   : > { %2897 = vmatprep.subr.bf16.mxu1 %v2280_v15 }
 0x28b   : > { %2898 = vmatpush3.bf16.msra.mxu1 %v2272_v2 }
 0x28c   : > { %2899 = vmatprep.subr.bf16.mxu1 %v2281_v43 }
 0x28f   : > { %2900 = vmatpush3.bf16.msra.mxu1 %v2273_v48 }
 0x292   : > { %2785 = vmatmul.mubr.msk.bf16.vlgmr.msra.gmra.mrb[64].mxu1 %vm2784_vm8, %v3756_v18  ;;  %v2403_v18 = vld [vmem:[%s4840_s6] sm:$0x1] }
 0x321   : > { %v2879_v31 = vpop.f32.mrb[64].mxu0 }
 0x322   : > { %v2880_v26 = vpop.f32.mrb[65].mxu0 }
 0x323   : > { %v2881_v51 = vadd.f32 %v2880_v26, %v2879_v31  ;;  %v2882_v47 = vpop.f32.mrb[66].mxu0 }
 0x324   : > { %v2883_v22 = vpop.f32.mrb[67].mxu0 }
 0x365   : > { %v2901_v42 = vpop.f32.mrb[64].mxu1 }
 0x366   : > { %v2902_v14 = vpop.f32.mrb[65].mxu1 }
 0x367   : > { %v2903_v50 = vadd.f32 %v2902_v14, %v2901_v42  ;;  %v2904_v5 = vpop.f32.mrb[66].mxu1 }
 0x368   : > { %v2905_v58 = vpop.f32.mrb[67].mxu1 }
 0x369   : > { %v2393_v29 = vadd.f32 %v2903_v50, %v2881_v51 }
 0x36b   : > { %3058 = vmatpush3.xpose.msra.mxu0 %v2393_v29 }
 0x36e   : > { %3060 = vmatmul.mubr.f32.vlgmr.msra.gmra.mrb[68].mxu0 %v2403_v18 }
 0x441   : > { %v2471_v48 = vpop.f32.mrb[68].mxu0 }
 0x442   : > { %2476 = vst.msk [vmem:[%s307_s17] sm:$0x1] %vm2475_vm10, %v2471_v48  ;;  %v3061_v59 = vpop.f32.mrb[69].mxu0 }
 0x443   : > { %3689 = shalt.err (!%p3686_p6)
}
 0x444   : > { %s3690_s12 = scalar_lea.hbm %s4787_s21, 16  ;;  %s3694_s23 = scalar_lea.hbm %s4841_s7, 32 }
 0x445   : > { %p3691_p7 = scmp.ne.s32.totalorder %s4787_s21, %s3690_s12  ;;  %p3695_p11 = scmp.lt.u32.totalorder %s4787_s21, %s4841_s7 }
 0x446   : > { %p3696_p12 = scmp.lt.u32.totalorder %s3694_s23, %s3690_s12  ;;  %p3698_p0 = scmp.lt.u32.totalorder %s3690_s12, %s4787_s21 }
 0x447   : > { %p3692_p9 = pnand %p3691_p7, %p3840_p4 }
 0x448   : > { %p3697_p13 = por %p3696_p12, %p3695_p11 }
 0x449   : > { %p3693_p10 = pneg %p3692_p9 }
 0x44a   : > { %p3699_p1 = por %p3698_p0, %p3697_p13 }
 0x44c   : > { %p3700_p2 = pnand %p3699_p1, %p3693_p10 }
 0x44e   : > { %3703 = shalt.err (!%p3700_p2)
}
 0x44f   : > { %3062 = dma.vmem_to_hbm [thread:$0]  (%p3840_p4), %s4789_s18, 16, %s4787_s21, %s2478_s22  }
 0x450 PF: > { %p3068_p3 = scmp.ge.s32.totalorder %s3754_s29, 2  ;;  %s2502_s20 = sand.u32 1, %s3734_s24  }
 0x451   : > { %s2503_s30 = scalar_lea.sflag [#allocation4], %s2502_s20 }
 0x452   : > { %p3065_p5 = pnand %p3068_p3, %p3847_p8 }
 0x454   : > { %3729 = dma.done.wait (!%p3065_p5), %s2503_s30, 16  }
 0x455   : > { %3731 = vsyncadd (!%p3065_p5), %s2503_s30, 4294967280  ;;  %s20_s29 = sadd.s32 1, %s3754_s29   ;;  %s4846_s24 = smov %s3738_s25 }
 0x456   : > { %p17_p6 = scmp.ge.s32.totalorder %s20_s29, 4   ;;  %s4847_s25 = smov %s3742_s26 }
 0x457   : > { %s4848_s26 = smov %s3853_s14  ;;  %s4849_s27 = smov %s3750_s28 }
 0x458   : > { %s4850_s28 = smov %s4852_s9  ;;  %19 = sbr.rel (!%p17_p6) target bundleno = 4 (0x4), region = 94 }
 0x45f   :  { %2507 = vsyncpa [#allocation4], 1 }
 0x460   :  { %2509 = vsyncpa [#allocation4 + $0x1], 1 }

</bundles_post_ra>
